<compile_context>
chip_gen: v6e
topology: v6e:2x2x1
jax: 0.10.0
libtpu: 0.0.40
codegen_flags: <defaults>
</compile_context>

<pallas_src>
import functools

import jax
import jax.numpy as jnp
from jax.experimental import pallas as pl
from jax.experimental.pallas import tpu as pltpu

ATOM_FEATS = [7, 5, 4, 4, 2, 2, 4, 3, 8]
EMB_DIM = sum(ATOM_FEATS)          # 39 (occupies lanes [0, 39) of the 128-lane state)
HIDDEN = 32                        # 4 * HIDDEN == 128 -> one lane-dense state vector
LANES = 4 * HIDDEN                 # 128
ALPHA = 0.01
BN_EPS = 1e-5

# Band offsets of the concat [x4 | x1 | x2 | x3] inside the 128-lane state.
_B0, _B1, _B2, _B3 = 0, HIDDEN, 2 * HIDDEN, 3 * HIDDEN


def _build_embed_codes():
    """Lane l of the gathered raw-feature matrix reads column SRC_COL[l] of x.
    CODE[l] >= 0  -> one-hot lane   (emit 1.0 iff value == CODE[l])
    CODE[l] == -1 -> continuous lane (pass value through)
    CODE[l] == -2 -> padding lane    (emit 0.0)."""
    src, code = [], []
    for i, size in enumerate(ATOM_FEATS[:-1]):      # 8 categorical features
        for c in range(size):
            src.append(i)
            code.append(float(c))
    for j in range(ATOM_FEATS[-1]):                 # 8 continuous features (cols 8..15)
        src.append(len(ATOM_FEATS) - 1 + j)
        code.append(-1.0)
    while len(src) < LANES:                         # pad to 128 lanes
        src.append(0)
        code.append(-2.0)
    return (jnp.asarray(src, jnp.int32),
            jnp.asarray(code, jnp.float32).reshape(1, LANES))


SRC_COL, EMBED_CODE = _build_embed_codes()


# ---------------------------------------------------------------------------
# Pallas kernel: one grid step = CHUNK_GRAPHS whole graphs, start to finish
# ---------------------------------------------------------------------------
def gconvnet_kernel(counts_ref, xg_ref, code_ref, a_ref,
                    w0_ref, b0_ref, w1_ref, b1_ref,
                    w2_ref, b2_ref, w3_ref, b3_ref,
                    mw1_ref, mb1_ref, mw2_ref, mb2_ref,
                    o_ref, *, alpha, chunk_graphs, per_graph):
    ci = pl.program_id(0)
    rows = chunk_graphs * per_graph

    # --- FeatureEmbedding (identity embedding == one-hot) as a single
    #     lane-parallel compare; no per-feature one_hot + concat in the wrapper.
    xg = xg_ref[...]                                 # (rows, 128) raw values, lane-gathered
    code = code_ref[...]                             # (1, 128)
    emb = jnp.where(code >= 0.0,
                    (xg == code).astype(jnp.float32),
                    jnp.where(code == -1.0, xg, 0.0))

    # --- A_hat = D^-1/2 (A + I) D^-1/2 for this chunk's diagonal block -------
    a = a_ref[0]                                     # (rows, rows) raw 0/1 adjacency
    rid = jax.lax.broadcasted_iota(jnp.int32, (rows, rows), 0)
    cid = jax.lax.broadcasted_iota(jnp.int32, (rows, rows), 1)
    a = jnp.maximum(a, (rid == cid).astype(jnp.float32))        # self-loops
    dr = jax.lax.rsqrt(jnp.sum(a, axis=1, keepdims=True))       # (rows, 1)
    dc = jax.lax.rsqrt(jnp.sum(a, axis=0, keepdims=True))       # (1, rows)
    a_hat = a * dr * dc

    def gcn(x, w_ref, b_ref):
        # Weights are zero-padded to (128, 128): each layer reads its input
        # band and writes its output band of the 128-lane state; all other
        # lanes stay exactly 0 (zero bias there, LeakyReLU(0) == 0).
        xw = jnp.dot(x, w_ref[...], preferred_element_type=jnp.float32)
        h = jnp.dot(a_hat, xw, preferred_element_type=jnp.float32) + b_ref[...]
        return jnp.where(h >= 0.0, h, alpha * h)

    y0 = gcn(emb, w0_ref, b0_ref)       # x0 -> band 3
    y1 = gcn(y0, w1_ref, b1_ref)        # x1 -> band 1
    y2 = gcn(y1, w2_ref, b2_ref)        # x2 -> bands 2 and 3 (duplicated block)
    x3 = y0 + y2                        # band 2 = x2, band 3 = x0 + x2 = x3
    y4 = gcn(x3, w3_ref, b3_ref)        # x4 -> band 0
    cat = y4 + y1 + x3                  # [x4 | x1 | x2 | x3], no masked stores

    # --- global_max_pool: graphs occupy fixed row-contiguous slots; rows past
    #     counts[g] are padding, masked with a finite sentinel (no -inf/NaN).
    neg = jnp.finfo(jnp.float32).min
    row_in_slot = jax.lax.broadcasted_iota(jnp.int32, (per_graph, 1), 0)
    pooled_rows = []
    for g in range(chunk_graphs):                                # static, small
        cnt = counts_ref[ci * chunk_graphs + g]                  # SMEM scalar
        blk = cat[g * per_graph:(g + 1) * per_graph, :]          # static slice
        pg = jnp.max(jnp.where(row_in_slot < cnt, blk, neg),
                     axis=0, keepdims=True)                      # (1, 128)
        pooled_rows.append(jnp.where(cnt > 0, pg, 0.0))          # empty-graph guard
    pooled = jnp.concatenate(pooled_rows, axis=0)                # (chunk_graphs, 128)

    # --- MLP head: Linear(4H->H) with eval-mode BatchNorm folded in, ReLU,
    #     then Linear(H->1) as a VPU multiply + lane reduce.
    hh = jnp.dot(pooled, mw1_ref[...],
                 preferred_element_type=jnp.float32) + mb1_ref[...]
    hr = jnp.maximum(hh, 0.0)
    o_ref[...] = jnp.sum(hr * mw2_ref[...], axis=1, keepdims=True) + mb2_ref[...]


def gconvnet_fused(counts, xg, a_raw, kparams, *, num_graphs, per_graph,
                   chunk_graphs):
    num_chunks, rows_c, _ = a_raw.shape
    (w0p, b0p, w1p, b1p, w2p, b2p, w3p, b3p, mw1f, mb1f, mw2r, mb2) = kparams

    def const_spec(shape):
        return pl.BlockSpec(shape, lambda ci, cnts: (0,) * len(shape))

    grid_spec = pltpu.PrefetchScalarGridSpec(
        num_scalar_prefetch=1,                       # per-graph node counts -> SMEM
        grid=(num_chunks,),
        in_specs=[
            pl.BlockSpec((rows_c, LANES), lambda ci, cnts: (ci, 0)),        # xg
            const_spec((1, LANES)),                                          # embed codes
            pl.BlockSpec((1, rows_c, rows_c), lambda ci, cnts: (ci, 0, 0)),  # A block
            const_spec((LANES, LANES)), const_spec((1, LANES)),              # init_graph
            const_spec((LANES, LANES)), const_spec((1, LANES)),              # head
            const_spec((LANES, LANES)), const_spec((1, LANES)),              # body
            const_spec((LANES, LANES)), const_spec((1, LANES)),              # tail
            const_spec((LANES, HIDDEN)), const_spec((1, HIDDEN)),            # mlp lin1 (+BN)
            const_spec((1, HIDDEN)), const_spec((1, 1)),                     # mlp lin2
        ],
        out_specs=pl.BlockSpec((chunk_graphs, 1), lambda ci, cnts: (ci, 0)),
    )
    kernel = functools.partial(gconvnet_kernel, alpha=ALPHA,
                               chunk_graphs=chunk_graphs, per_graph=per_graph)
    return pl.pallas_call(
        kernel,
        out_shape=jax.ShapeDtypeStruct((num_graphs, 1), jnp.float32),
        grid_spec=grid_spec,
        compiler_params=pltpu.CompilerParams(
            dimension_semantics=("parallel",)),      # both TensorCores on v7x
    )(counts, xg, EMBED_CODE, a_raw,
      w0p, b0p, w1p, b1p, w2p, b2p, w3p, b3p, mw1f, mb1f, mw2r, mb2)


# ---------------------------------------------------------------------------
# Parameters: PyTorch-layout init + one-time repack into kernel layout
# ---------------------------------------------------------------------------
def init_params(seed, hidden=HIDDEN):
    key = jax.random.PRNGKey(seed)

    def gcn_layer(k, fin, fout):
        k1, k2 = jax.random.split(k)
        s = 1.0 / jnp.sqrt(jnp.float32(fin))
        return dict(w=s * jax.random.normal(k1, (fin, fout), jnp.float32),
                    b=s * jax.random.normal(k2, (1, fout), jnp.float32))

    ks = jax.random.split(key, 8)
    s1 = 1.0 / jnp.sqrt(jnp.float32(4 * hidden))
    s2 = 1.0 / jnp.sqrt(jnp.float32(hidden))
    return dict(
        init_graph=gcn_layer(ks[0], EMB_DIM, hidden),
        head=gcn_layer(ks[1], hidden, hidden),
        body=gcn_layer(ks[2], hidden, hidden),
        tail=gcn_layer(ks[3], hidden, hidden),
        mlp=dict(
            w1=s1 * jax.random.normal(ks[4], (4 * hidden, hidden), jnp.float32),
            b1=s1 * jax.random.normal(ks[5], (1, hidden), jnp.float32),
            gamma=jnp.ones((1, hidden), jnp.float32),
            beta=jnp.zeros((1, hidden), jnp.float32),
            running_mean=jnp.zeros((1, hidden), jnp.float32),
            running_var=jnp.ones((1, hidden), jnp.float32),
            w2=s2 * jax.random.normal(ks[6], (hidden, 1), jnp.float32),
            b2=s2 * jax.random.normal(ks[7], (1, 1), jnp.float32),
        ),
    )


def prepare_params(p, hidden=HIDDEN, eps=BN_EPS):
    """One-time (outside the hot path) repack: zero-pad each GCN weight to
    (128, 128), placing its real 32-wide block at that layer's concat band,
    and fold eval-mode BatchNorm into the first MLP Linear."""
    def pad_gcn(layer, in_off, out_offs):
        w, b = layer["w"], layer["b"]
        wp = jnp.zeros((LANES, LANES), jnp.float32)
        bp = jnp.zeros((1, LANES), jnp.float32)
        for o in out_offs:
            wp = wp.at[in_off:in_off + w.shape[0], o:o + hidden].set(w)
            bp = bp.at[:, o:o + hidden].set(b)
        return wp, bp

    w0p, b0p = pad_gcn(p["init_graph"], 0, [_B3])      # emb lanes -> x0 @ band 3
    w1p, b1p = pad_gcn(p["head"], _B3, [_B1])          # x0 -> x1 @ band 1
    w2p, b2p = pad_gcn(p["body"], _B1, [_B2, _B3])     # x1 -> x2 @ bands 2 & 3
    w3p, b3p = pad_gcn(p["tail"], _B3, [_B0])          # x3 -> x4 @ band 0

    m = p["mlp"]
    scale = m["gamma"] * jax.lax.rsqrt(m["running_var"] + eps)   # eval-mode BN
    shift = m["beta"] - m["running_mean"] * scale
    mw1f = m["w1"] * scale                              # fold BN into Linear1
    mb1f = m["b1"] * scale + shift
    mw2r = m["w2"].T                                    # (1, H) row for VPU reduce
    return (w0p, b0p, w1p, b1p, w2p, b2p, w3p, b3p, mw1f, mb1f, mw2r, m["b2"])


# ---------------------------------------------------------------------------
# Thin wrapper (plain JAX): one lane gather + one adjacency scatter
# ---------------------------------------------------------------------------
def gconvnet_forward(kparams, x, edge_index, counts, *, per_graph, chunk_graphs):
    """x: (N, 16) raw node features; edge_index: (2, E) intra-graph edges (both
    directions for undirected graphs); counts: (G,) valid nodes per graph.
    Graphs occupy fixed row-contiguous slots of `per_graph` rows."""
    n = x.shape[0]
    num_graphs = counts.shape[0]
    rows_c = chunk_graphs * per_graph
    num_chunks = n // rows_c

    # Lane-gather raw feature values once; one-hot expansion happens in-kernel.
    xg = jnp.take(x, SRC_COL, axis=1).astype(jnp.float32)            # (N, 128)

    # Per-chunk diagonal adjacency blocks (A is block-diagonal across graphs):
    # raw 0/1 scatter only; self-loops + normalization happen in-kernel.
    src, dst = edge_index[0], edge_index[1]
    a_raw = jnp.zeros((num_chunks, rows_c, rows_c), jnp.float32).at[
        dst // rows_c, dst % rows_c, src % rows_c].set(1.0)

    out = gconvnet_fused(counts, xg, a_raw, kparams,
                         num_graphs=num_graphs, per_graph=per_graph,
                         chunk_graphs=chunk_graphs)
    return out[:, 0]                                                 # (G,)


# ---------------------------------------------------------------------------
# Pure-JAX reference (eval-mode BN) for correctness verification
# ---------------------------------------------------------------------------
def reference_forward(params, x, edge_index, counts, per_graph):
    n = x.shape[0]
    feats = [jax.nn.one_hot(x[:, i].astype(jnp.int32), size, dtype=jnp.float32)
             for i, size in enumerate(ATOM_FEATS[:-1])]
    feats.append(x[:, -ATOM_FEATS[-1]:])
    feats = jnp.concatenate(feats, axis=1)

    src, dst = edge_index[0], edge_index[1]
    adj = jnp.zeros((n, n), jnp.float32).at[dst, src].set(1.0)
    adj = jnp.maximum(adj, jnp.eye(n, dtype=jnp.float32))
    dinv = jax.lax.rsqrt(jnp.sum(adj, axis=1, keepdims=True))
    a_hat = dinv * adj * dinv.T

    def gcn(h, layer):
        z = a_hat @ (h @ layer["w"]) + layer["b"]
        return jnp.where(z >= 0.0, z, ALPHA * z)

    x0 = gcn(feats, params["init_graph"])
    x1 = gcn(x0, params["head"])
    x2 = gcn(x1, params["body"])
    x3 = x0 + x2
    x4 = gcn(x3, params["tail"])
    cat = jnp.concatenate([x4, x1, x2, x3], axis=1)

    g_of_row = jnp.arange(n) // per_graph
    r_in_slot = jnp.arange(n) % per_graph
    valid = r_in_slot < counts[g_of_row]
    neg = jnp.finfo(jnp.float32).min
    pooled = jnp.stack([
        jnp.max(jnp.where(((g_of_row == g) & valid)[:, None], cat, neg), axis=0)
        for g in range(counts.shape[0])
    ])

    m = params["mlp"]
    h = pooled @ m["w1"] + m["b1"]
    h = (h - m["running_mean"]) * jax.lax.rsqrt(m["running_var"] + BN_EPS) \
        * m["gamma"] + m["beta"]
    h = jnp.maximum(h, 0.0)
    return (h @ m["w2"] + m["b2"])[:, 0]


# ---------------------------------------------------------------------------
# Driver
# ---------------------------------------------------------------------------
if __name__ == "__main__":
    G = 16                  # graphs per batch
    PER_GRAPH = 8           # node-slot rows per graph (padded)
    CHUNK_GRAPHS = 8        # graphs per grid step -> 64-row chunks, 2 parallel steps
    N = G * PER_GRAPH       # 128 node rows
    E_PER = 12              # undirected edges per graph

    key = jax.random.PRNGKey(0)
    k_cat, k_cont, k_cnt, k_edge = jax.random.split(key, 4)

    # per-graph valid node counts (5..8); rows past the count are padding
    counts = jax.random.randint(k_cnt, (G,), 5, PER_GRAPH + 1).astype(jnp.int32)
    counts_host = [int(counts[g]) for g in range(G)]

    # raw node features: 8 categorical columns + 8 continuous columns -> (N, 16)
    cat_cols = [
        jax.random.randint(jax.random.fold_in(k_cat, i), (N,), 0, size).astype(jnp.float32)
        for i, size in enumerate(ATOM_FEATS[:-1])
    ]
    cont = jax.random.normal(k_cont, (N, ATOM_FEATS[-1]), dtype=jnp.float32)
    x = jnp.concatenate([jnp.stack(cat_cols, axis=1), cont], axis=1)    # (128, 16)

    # undirected intra-graph edges among each graph's valid nodes
    srcs, dsts = [], []
    for g in range(G):
        c = counts_host[g]
        s = jax.random.randint(jax.random.fold_in(k_edge, 2 * g),
                               (E_PER,), 0, c) + g * PER_GRAPH
        d = jax.random.randint(jax.random.fold_in(k_edge, 2 * g + 1),
                               (E_PER,), 0, c) + g * PER_GRAPH
        srcs += [s, d]
        dsts += [d, s]
    edge_index = jnp.stack([jnp.concatenate(srcs),
                            jnp.concatenate(dsts)]).astype(jnp.int32)   # (2, 384)

    params = init_params(42)             # deterministic, mirrors torch.manual_seed(42)
    kparams = prepare_params(params)     # pad / fold once, outside the hot path

    fwd = jax.jit(functools.partial(gconvnet_forward,
                                    per_graph=PER_GRAPH,
                                    chunk_graphs=CHUNK_GRAPHS))
    out = fwd(kparams, x, edge_index, counts)
    jax.block_until_ready(out)

    assert out.shape == (G,) and out.dtype == jnp.float32
    assert bool(jnp.all(jnp.isfinite(out)))

    with jax.default_matmul_precision("highest"):
        ref = reference_forward(params, x, edge_index, counts, PER_GRAPH)
    assert bool(jnp.allclose(out, ref, rtol=1e-2, atol=1e-2)), (out, ref)

    print("KERNEL_OK")
</pallas_src>

<mosaic_0001>
module attributes {stable_mosaic.version = 11 : i64} {
  func.func @gconvnet_kernel(%arg0: i32, %arg1: memref<16xi32, #tpu.memory_space<smem>>, %arg2: memref<64x128xf32, #tpu.memory_space<vmem>>, %arg3: memref<1x128xf32, #tpu.memory_space<vmem>>, %arg4: memref<1x64x64xf32, #tpu.memory_space<vmem>>, %arg5: memref<128x128xf32, #tpu.memory_space<vmem>>, %arg6: memref<1x128xf32, #tpu.memory_space<vmem>>, %arg7: memref<128x128xf32, #tpu.memory_space<vmem>>, %arg8: memref<1x128xf32, #tpu.memory_space<vmem>>, %arg9: memref<128x128xf32, #tpu.memory_space<vmem>>, %arg10: memref<1x128xf32, #tpu.memory_space<vmem>>, %arg11: memref<128x128xf32, #tpu.memory_space<vmem>>, %arg12: memref<1x128xf32, #tpu.memory_space<vmem>>, %arg13: memref<128x32xf32, #tpu.memory_space<vmem>>, %arg14: memref<1x32xf32, #tpu.memory_space<vmem>>, %arg15: memref<1x32xf32, #tpu.memory_space<vmem>>, %arg16: memref<1x1xf32, #tpu.memory_space<vmem>>, %arg17: memref<8x1xf32, #tpu.memory_space<vmem>>) attributes {dimension_semantics = [#tpu.dimension_semantics<parallel>], iteration_bounds = array<i64: 2>, scalar_prefetch = 1 : i64, scratch_operands = 0 : i64, tpu.core_type = #tpu.core_type<tc>, window_params = [{transform_indices = @transform_0, window_bounds = array<i64: 64, 128>}, {pipeline_mode = #tpu.pipeline_mode<synchronous>, transform_indices = @transform_1, window_bounds = array<i64: 1, 128>}, {transform_indices = @transform_2, window_bounds = array<i64: 1, 64, 64>}, {pipeline_mode = #tpu.pipeline_mode<synchronous>, transform_indices = @transform_3, window_bounds = array<i64: 128, 128>}, {pipeline_mode = #tpu.pipeline_mode<synchronous>, transform_indices = @transform_4, window_bounds = array<i64: 1, 128>}, {pipeline_mode = #tpu.pipeline_mode<synchronous>, transform_indices = @transform_5, window_bounds = array<i64: 128, 128>}, {pipeline_mode = #tpu.pipeline_mode<synchronous>, transform_indices = @transform_6, window_bounds = array<i64: 1, 128>}, {pipeline_mode = #tpu.pipeline_mode<synchronous>, transform_indices = @transform_7, window_bounds = array<i64: 128, 128>}, {pipeline_mode = #tpu.pipeline_mode<synchronous>, transform_indices = @transform_8, window_bounds = array<i64: 1, 128>}, {pipeline_mode = #tpu.pipeline_mode<synchronous>, transform_indices = @transform_9, window_bounds = array<i64: 128, 128>}, {pipeline_mode = #tpu.pipeline_mode<synchronous>, transform_indices = @transform_10, window_bounds = array<i64: 1, 128>}, {pipeline_mode = #tpu.pipeline_mode<synchronous>, transform_indices = @transform_11, window_bounds = array<i64: 128, 32>}, {pipeline_mode = #tpu.pipeline_mode<synchronous>, transform_indices = @transform_12, window_bounds = array<i64: 1, 32>}, {pipeline_mode = #tpu.pipeline_mode<synchronous>, transform_indices = @transform_13, window_bounds = array<i64: 1, 32>}, {pipeline_mode = #tpu.pipeline_mode<synchronous>, transform_indices = @transform_14, window_bounds = array<i64: 1, 1>}, {transform_indices = @transform_15, window_bounds = array<i64: 8, 1>}]} {
    %c0 = arith.constant 0 : index
    %c0_0 = arith.constant 0 : index
    %0 = vector.load %arg2[%c0, %c0_0] : memref<64x128xf32, #tpu.memory_space<vmem>>, vector<64x128xf32>
    %c0_1 = arith.constant 0 : index
    %c0_2 = arith.constant 0 : index
    %1 = vector.load %arg3[%c0_1, %c0_2] : memref<1x128xf32, #tpu.memory_space<vmem>>, vector<1x128xf32>
    %cst = arith.constant 0.000000e+00 : f32
    %2 = vector.broadcast %cst : f32 to vector<1x128xf32>
    %3 = arith.cmpf oge, %1, %2 : vector<1x128xf32>
    %4 = vector.broadcast %1 : vector<1x128xf32> to vector<64x128xf32>
    %5 = arith.cmpf oeq, %0, %4 : vector<64x128xf32>
    %6 = arith.extui %5 : vector<64x128xi1> to vector<64x128xi32>
    %7 = arith.sitofp %6 : vector<64x128xi32> to vector<64x128xf32>
    %cst_3 = arith.constant -1.000000e+00 : f32
    %8 = vector.broadcast %cst_3 : f32 to vector<1x128xf32>
    %9 = arith.cmpf oeq, %1, %8 : vector<1x128xf32>
    %cst_4 = arith.constant 0.000000e+00 : f32
    %10 = vector.shape_cast %9 : vector<1x128xi1> to vector<1x128xi1>
    %11 = vector.broadcast %10 : vector<1x128xi1> to vector<64x128xi1>
    %12 = vector.broadcast %cst_4 : f32 to vector<64x128xf32>
    %13 = arith.select %11, %0, %12 : vector<64x128xi1>, vector<64x128xf32>
    %14 = vector.shape_cast %3 : vector<1x128xi1> to vector<1x128xi1>
    %15 = vector.broadcast %14 : vector<1x128xi1> to vector<64x128xi1>
    %16 = arith.select %15, %7, %13 : vector<64x128xi1>, vector<64x128xf32>
    %c0_5 = arith.constant 0 : index
    %c0_6 = arith.constant 0 : index
    %c0_7 = arith.constant 0 : index
    %17 = vector.load %arg4[%c0_5, %c0_6, %c0_7] : memref<1x64x64xf32, #tpu.memory_space<vmem>>, vector<1x64x64xf32>
    %18 = vector.shape_cast %17 : vector<1x64x64xf32> to vector<64x64xf32>
    %19 = tpu.iota {dimensions = array<i32: 0>} : vector<64x64xi32>
    %20 = tpu.iota {dimensions = array<i32: 1>} : vector<64x64xi32>
    %21 = arith.cmpi eq, %19, %20 : vector<64x64xi32>
    %22 = arith.extui %21 : vector<64x64xi1> to vector<64x64xi32>
    %23 = arith.sitofp %22 : vector<64x64xi32> to vector<64x64xf32>
    %24 = arith.maximumf %18, %23 : vector<64x64xf32>
    %cst_8 = arith.constant dense<0.000000e+00> : vector<64xf32>
    %25 = vector.multi_reduction <add>, %24, %cst_8 [1] : vector<64x64xf32> to vector<64xf32>
    %26 = vector.shape_cast %25 : vector<64xf32> to vector<64x1xf32>
    %27 = math.rsqrt %26 : vector<64x1xf32>
    %cst_9 = arith.constant dense<0.000000e+00> : vector<64xf32>
    %28 = vector.multi_reduction <add>, %24, %cst_9 [0] : vector<64x64xf32> to vector<64xf32>
    %29 = vector.shape_cast %28 : vector<64xf32> to vector<1x64xf32>
    %30 = math.rsqrt %29 : vector<1x64xf32>
    %31 = vector.broadcast %27 : vector<64x1xf32> to vector<64x64xf32>
    %32 = arith.mulf %24, %31 : vector<64x64xf32>
    %33 = vector.broadcast %30 : vector<1x64xf32> to vector<64x64xf32>
    %34 = arith.mulf %32, %33 : vector<64x64xf32>
    %c0_10 = arith.constant 0 : index
    %c0_11 = arith.constant 0 : index
    %35 = vector.load %arg5[%c0_10, %c0_11] : memref<128x128xf32, #tpu.memory_space<vmem>>, vector<128x128xf32>
    %cst_12 = arith.constant dense<0.000000e+00> : vector<64x128xf32>
    %36 = tpu.matmul %16, %35, %cst_12 {dimension_numbers = #tpu.dot_dimension_numbers<[1], [0], [0], [1], [0, 0, 1, 1], [], []>} : vector<64x128xf32>, vector<128x128xf32>, vector<64x128xf32> -> vector<64x128xf32>
    %cst_13 = arith.constant dense<0.000000e+00> : vector<64x128xf32>
    %37 = tpu.matmul %34, %36, %cst_13 {dimension_numbers = #tpu.dot_dimension_numbers<[1], [0], [0], [1], [0, 0, 1, 1], [], []>} : vector<64x64xf32>, vector<64x128xf32>, vector<64x128xf32> -> vector<64x128xf32>
    %c0_14 = arith.constant 0 : index
    %c0_15 = arith.constant 0 : index
    %38 = vector.load %arg6[%c0_14, %c0_15] : memref<1x128xf32, #tpu.memory_space<vmem>>, vector<1x128xf32>
    %39 = vector.broadcast %38 : vector<1x128xf32> to vector<64x128xf32>
    %40 = arith.addf %37, %39 : vector<64x128xf32>
    %cst_16 = arith.constant 0.000000e+00 : f32
    %41 = vector.broadcast %cst_16 : f32 to vector<64x128xf32>
    %42 = arith.cmpf oge, %40, %41 : vector<64x128xf32>
    %cst_17 = arith.constant 0.00999999977 : f32
    %43 = vector.broadcast %cst_17 : f32 to vector<64x128xf32>
    %44 = arith.mulf %43, %40 : vector<64x128xf32>
    %45 = arith.select %42, %40, %44 : vector<64x128xi1>, vector<64x128xf32>
    %c0_18 = arith.constant 0 : index
    %c0_19 = arith.constant 0 : index
    %46 = vector.load %arg7[%c0_18, %c0_19] : memref<128x128xf32, #tpu.memory_space<vmem>>, vector<128x128xf32>
    %cst_20 = arith.constant dense<0.000000e+00> : vector<64x128xf32>
    %47 = tpu.matmul %45, %46, %cst_20 {dimension_numbers = #tpu.dot_dimension_numbers<[1], [0], [0], [1], [0, 0, 1, 1], [], []>} : vector<64x128xf32>, vector<128x128xf32>, vector<64x128xf32> -> vector<64x128xf32>
    %cst_21 = arith.constant dense<0.000000e+00> : vector<64x128xf32>
    %48 = tpu.matmul %34, %47, %cst_21 {dimension_numbers = #tpu.dot_dimension_numbers<[1], [0], [0], [1], [0, 0, 1, 1], [], []>} : vector<64x64xf32>, vector<64x128xf32>, vector<64x128xf32> -> vector<64x128xf32>
    %c0_22 = arith.constant 0 : index
    %c0_23 = arith.constant 0 : index
    %49 = vector.load %arg8[%c0_22, %c0_23] : memref<1x128xf32, #tpu.memory_space<vmem>>, vector<1x128xf32>
    %50 = vector.broadcast %49 : vector<1x128xf32> to vector<64x128xf32>
    %51 = arith.addf %48, %50 : vector<64x128xf32>
    %cst_24 = arith.constant 0.000000e+00 : f32
    %52 = vector.broadcast %cst_24 : f32 to vector<64x128xf32>
    %53 = arith.cmpf oge, %51, %52 : vector<64x128xf32>
    %cst_25 = arith.constant 0.00999999977 : f32
    %54 = vector.broadcast %cst_25 : f32 to vector<64x128xf32>
    %55 = arith.mulf %54, %51 : vector<64x128xf32>
    %56 = arith.select %53, %51, %55 : vector<64x128xi1>, vector<64x128xf32>
    %c0_26 = arith.constant 0 : index
    %c0_27 = arith.constant 0 : index
    %57 = vector.load %arg9[%c0_26, %c0_27] : memref<128x128xf32, #tpu.memory_space<vmem>>, vector<128x128xf32>
    %cst_28 = arith.constant dense<0.000000e+00> : vector<64x128xf32>
    %58 = tpu.matmul %56, %57, %cst_28 {dimension_numbers = #tpu.dot_dimension_numbers<[1], [0], [0], [1], [0, 0, 1, 1], [], []>} : vector<64x128xf32>, vector<128x128xf32>, vector<64x128xf32> -> vector<64x128xf32>
    %cst_29 = arith.constant dense<0.000000e+00> : vector<64x128xf32>
    %59 = tpu.matmul %34, %58, %cst_29 {dimension_numbers = #tpu.dot_dimension_numbers<[1], [0], [0], [1], [0, 0, 1, 1], [], []>} : vector<64x64xf32>, vector<64x128xf32>, vector<64x128xf32> -> vector<64x128xf32>
    %c0_30 = arith.constant 0 : index
    %c0_31 = arith.constant 0 : index
    %60 = vector.load %arg10[%c0_30, %c0_31] : memref<1x128xf32, #tpu.memory_space<vmem>>, vector<1x128xf32>
    %61 = vector.broadcast %60 : vector<1x128xf32> to vector<64x128xf32>
    %62 = arith.addf %59, %61 : vector<64x128xf32>
    %cst_32 = arith.constant 0.000000e+00 : f32
    %63 = vector.broadcast %cst_32 : f32 to vector<64x128xf32>
    %64 = arith.cmpf oge, %62, %63 : vector<64x128xf32>
    %cst_33 = arith.constant 0.00999999977 : f32
    %65 = vector.broadcast %cst_33 : f32 to vector<64x128xf32>
    %66 = arith.mulf %65, %62 : vector<64x128xf32>
    %67 = arith.select %64, %62, %66 : vector<64x128xi1>, vector<64x128xf32>
    %68 = arith.addf %45, %67 : vector<64x128xf32>
    %c0_34 = arith.constant 0 : index
    %c0_35 = arith.constant 0 : index
    %69 = vector.load %arg11[%c0_34, %c0_35] : memref<128x128xf32, #tpu.memory_space<vmem>>, vector<128x128xf32>
    %cst_36 = arith.constant dense<0.000000e+00> : vector<64x128xf32>
    %70 = tpu.matmul %68, %69, %cst_36 {dimension_numbers = #tpu.dot_dimension_numbers<[1], [0], [0], [1], [0, 0, 1, 1], [], []>} : vector<64x128xf32>, vector<128x128xf32>, vector<64x128xf32> -> vector<64x128xf32>
    %cst_37 = arith.constant dense<0.000000e+00> : vector<64x128xf32>
    %71 = tpu.matmul %34, %70, %cst_37 {dimension_numbers = #tpu.dot_dimension_numbers<[1], [0], [0], [1], [0, 0, 1, 1], [], []>} : vector<64x64xf32>, vector<64x128xf32>, vector<64x128xf32> -> vector<64x128xf32>
    %c0_38 = arith.constant 0 : index
    %c0_39 = arith.constant 0 : index
    %72 = vector.load %arg12[%c0_38, %c0_39] : memref<1x128xf32, #tpu.memory_space<vmem>>, vector<1x128xf32>
    %73 = vector.broadcast %72 : vector<1x128xf32> to vector<64x128xf32>
    %74 = arith.addf %71, %73 : vector<64x128xf32>
    %cst_40 = arith.constant 0.000000e+00 : f32
    %75 = vector.broadcast %cst_40 : f32 to vector<64x128xf32>
    %76 = arith.cmpf oge, %74, %75 : vector<64x128xf32>
    %cst_41 = arith.constant 0.00999999977 : f32
    %77 = vector.broadcast %cst_41 : f32 to vector<64x128xf32>
    %78 = arith.mulf %77, %74 : vector<64x128xf32>
    %79 = arith.select %76, %74, %78 : vector<64x128xi1>, vector<64x128xf32>
    %80 = arith.addf %79, %56 : vector<64x128xf32>
    %81 = arith.addf %80, %68 : vector<64x128xf32>
    %82 = tpu.iota {dimensions = array<i32: 0>} : vector<8x1xi32>
    %c8_i32 = arith.constant 8 : i32
    %83 = arith.muli %arg0, %c8_i32 : i32
    %c0_i32 = arith.constant 0 : i32
    %84 = arith.addi %83, %c0_i32 : i32
    %85 = arith.index_cast %84 : i32 to index
    %86 = memref.load %arg1[%85] : memref<16xi32, #tpu.memory_space<smem>>
    %87 = vector.extract_strided_slice %81 {offsets = [0, 0], sizes = [8, 128], strides = [1, 1]} : vector<64x128xf32> to vector<8x128xf32>
    %88 = vector.broadcast %86 : i32 to vector<8x1xi32>
    %89 = arith.cmpi slt, %82, %88 : vector<8x1xi32>
    %cst_42 = arith.constant -3.40282347E+38 : f32
    %90 = vector.shape_cast %89 : vector<8x1xi1> to vector<8x1xi1>
    %91 = vector.broadcast %90 : vector<8x1xi1> to vector<8x128xi1>
    %92 = vector.broadcast %cst_42 : f32 to vector<8x128xf32>
    %93 = arith.select %91, %87, %92 : vector<8x128xi1>, vector<8x128xf32>
    %cst_43 = arith.constant dense<0xFF800000> : vector<128xf32>
    %94 = vector.multi_reduction <maximumf>, %93, %cst_43 [0] : vector<8x128xf32> to vector<128xf32>
    %95 = vector.shape_cast %94 : vector<128xf32> to vector<1x128xf32>
    %c0_i32_44 = arith.constant 0 : i32
    %96 = arith.cmpi sgt, %86, %c0_i32_44 : i32
    %cst_45 = arith.constant 0.000000e+00 : f32
    %97 = vector.broadcast %cst_45 : f32 to vector<1x128xf32>
    %98 = arith.select %96, %95, %97 : vector<1x128xf32>
    %c8_i32_46 = arith.constant 8 : i32
    %99 = arith.muli %arg0, %c8_i32_46 : i32
    %c1_i32 = arith.constant 1 : i32
    %100 = arith.addi %99, %c1_i32 : i32
    %101 = arith.index_cast %100 : i32 to index
    %102 = memref.load %arg1[%101] : memref<16xi32, #tpu.memory_space<smem>>
    %103 = vector.extract_strided_slice %81 {offsets = [8, 0], sizes = [8, 128], strides = [1, 1]} : vector<64x128xf32> to vector<8x128xf32>
    %104 = vector.broadcast %102 : i32 to vector<8x1xi32>
    %105 = arith.cmpi slt, %82, %104 : vector<8x1xi32>
    %cst_47 = arith.constant -3.40282347E+38 : f32
    %106 = vector.shape_cast %105 : vector<8x1xi1> to vector<8x1xi1>
    %107 = vector.broadcast %106 : vector<8x1xi1> to vector<8x128xi1>
    %108 = vector.broadcast %cst_47 : f32 to vector<8x128xf32>
    %109 = arith.select %107, %103, %108 : vector<8x128xi1>, vector<8x128xf32>
    %cst_48 = arith.constant dense<0xFF800000> : vector<128xf32>
    %110 = vector.multi_reduction <maximumf>, %109, %cst_48 [0] : vector<8x128xf32> to vector<128xf32>
    %111 = vector.shape_cast %110 : vector<128xf32> to vector<1x128xf32>
    %c0_i32_49 = arith.constant 0 : i32
    %112 = arith.cmpi sgt, %102, %c0_i32_49 : i32
    %cst_50 = arith.constant 0.000000e+00 : f32
    %113 = vector.broadcast %cst_50 : f32 to vector<1x128xf32>
    %114 = arith.select %112, %111, %113 : vector<1x128xf32>
    %c8_i32_51 = arith.constant 8 : i32
    %115 = arith.muli %arg0, %c8_i32_51 : i32
    %c2_i32 = arith.constant 2 : i32
    %116 = arith.addi %115, %c2_i32 : i32
    %117 = arith.index_cast %116 : i32 to index
    %118 = memref.load %arg1[%117] : memref<16xi32, #tpu.memory_space<smem>>
    %119 = vector.extract_strided_slice %81 {offsets = [16, 0], sizes = [8, 128], strides = [1, 1]} : vector<64x128xf32> to vector<8x128xf32>
    %120 = vector.broadcast %118 : i32 to vector<8x1xi32>
    %121 = arith.cmpi slt, %82, %120 : vector<8x1xi32>
    %cst_52 = arith.constant -3.40282347E+38 : f32
    %122 = vector.shape_cast %121 : vector<8x1xi1> to vector<8x1xi1>
    %123 = vector.broadcast %122 : vector<8x1xi1> to vector<8x128xi1>
    %124 = vector.broadcast %cst_52 : f32 to vector<8x128xf32>
    %125 = arith.select %123, %119, %124 : vector<8x128xi1>, vector<8x128xf32>
    %cst_53 = arith.constant dense<0xFF800000> : vector<128xf32>
    %126 = vector.multi_reduction <maximumf>, %125, %cst_53 [0] : vector<8x128xf32> to vector<128xf32>
    %127 = vector.shape_cast %126 : vector<128xf32> to vector<1x128xf32>
    %c0_i32_54 = arith.constant 0 : i32
    %128 = arith.cmpi sgt, %118, %c0_i32_54 : i32
    %cst_55 = arith.constant 0.000000e+00 : f32
    %129 = vector.broadcast %cst_55 : f32 to vector<1x128xf32>
    %130 = arith.select %128, %127, %129 : vector<1x128xf32>
    %c8_i32_56 = arith.constant 8 : i32
    %131 = arith.muli %arg0, %c8_i32_56 : i32
    %c3_i32 = arith.constant 3 : i32
    %132 = arith.addi %131, %c3_i32 : i32
    %133 = arith.index_cast %132 : i32 to index
    %134 = memref.load %arg1[%133] : memref<16xi32, #tpu.memory_space<smem>>
    %135 = vector.extract_strided_slice %81 {offsets = [24, 0], sizes = [8, 128], strides = [1, 1]} : vector<64x128xf32> to vector<8x128xf32>
    %136 = vector.broadcast %134 : i32 to vector<8x1xi32>
    %137 = arith.cmpi slt, %82, %136 : vector<8x1xi32>
    %cst_57 = arith.constant -3.40282347E+38 : f32
    %138 = vector.shape_cast %137 : vector<8x1xi1> to vector<8x1xi1>
    %139 = vector.broadcast %138 : vector<8x1xi1> to vector<8x128xi1>
    %140 = vector.broadcast %cst_57 : f32 to vector<8x128xf32>
    %141 = arith.select %139, %135, %140 : vector<8x128xi1>, vector<8x128xf32>
    %cst_58 = arith.constant dense<0xFF800000> : vector<128xf32>
    %142 = vector.multi_reduction <maximumf>, %141, %cst_58 [0] : vector<8x128xf32> to vector<128xf32>
    %143 = vector.shape_cast %142 : vector<128xf32> to vector<1x128xf32>
    %c0_i32_59 = arith.constant 0 : i32
    %144 = arith.cmpi sgt, %134, %c0_i32_59 : i32
    %cst_60 = arith.constant 0.000000e+00 : f32
    %145 = vector.broadcast %cst_60 : f32 to vector<1x128xf32>
    %146 = arith.select %144, %143, %145 : vector<1x128xf32>
    %c8_i32_61 = arith.constant 8 : i32
    %147 = arith.muli %arg0, %c8_i32_61 : i32
    %c4_i32 = arith.constant 4 : i32
    %148 = arith.addi %147, %c4_i32 : i32
    %149 = arith.index_cast %148 : i32 to index
    %150 = memref.load %arg1[%149] : memref<16xi32, #tpu.memory_space<smem>>
    %151 = vector.extract_strided_slice %81 {offsets = [32, 0], sizes = [8, 128], strides = [1, 1]} : vector<64x128xf32> to vector<8x128xf32>
    %152 = vector.broadcast %150 : i32 to vector<8x1xi32>
    %153 = arith.cmpi slt, %82, %152 : vector<8x1xi32>
    %cst_62 = arith.constant -3.40282347E+38 : f32
    %154 = vector.shape_cast %153 : vector<8x1xi1> to vector<8x1xi1>
    %155 = vector.broadcast %154 : vector<8x1xi1> to vector<8x128xi1>
    %156 = vector.broadcast %cst_62 : f32 to vector<8x128xf32>
    %157 = arith.select %155, %151, %156 : vector<8x128xi1>, vector<8x128xf32>
    %cst_63 = arith.constant dense<0xFF800000> : vector<128xf32>
    %158 = vector.multi_reduction <maximumf>, %157, %cst_63 [0] : vector<8x128xf32> to vector<128xf32>
    %159 = vector.shape_cast %158 : vector<128xf32> to vector<1x128xf32>
    %c0_i32_64 = arith.constant 0 : i32
    %160 = arith.cmpi sgt, %150, %c0_i32_64 : i32
    %cst_65 = arith.constant 0.000000e+00 : f32
    %161 = vector.broadcast %cst_65 : f32 to vector<1x128xf32>
    %162 = arith.select %160, %159, %161 : vector<1x128xf32>
    %c8_i32_66 = arith.constant 8 : i32
    %163 = arith.muli %arg0, %c8_i32_66 : i32
    %c5_i32 = arith.constant 5 : i32
    %164 = arith.addi %163, %c5_i32 : i32
    %165 = arith.index_cast %164 : i32 to index
    %166 = memref.load %arg1[%165] : memref<16xi32, #tpu.memory_space<smem>>
    %167 = vector.extract_strided_slice %81 {offsets = [40, 0], sizes = [8, 128], strides = [1, 1]} : vector<64x128xf32> to vector<8x128xf32>
    %168 = vector.broadcast %166 : i32 to vector<8x1xi32>
    %169 = arith.cmpi slt, %82, %168 : vector<8x1xi32>
    %cst_67 = arith.constant -3.40282347E+38 : f32
    %170 = vector.shape_cast %169 : vector<8x1xi1> to vector<8x1xi1>
    %171 = vector.broadcast %170 : vector<8x1xi1> to vector<8x128xi1>
    %172 = vector.broadcast %cst_67 : f32 to vector<8x128xf32>
    %173 = arith.select %171, %167, %172 : vector<8x128xi1>, vector<8x128xf32>
    %cst_68 = arith.constant dense<0xFF800000> : vector<128xf32>
    %174 = vector.multi_reduction <maximumf>, %173, %cst_68 [0] : vector<8x128xf32> to vector<128xf32>
    %175 = vector.shape_cast %174 : vector<128xf32> to vector<1x128xf32>
    %c0_i32_69 = arith.constant 0 : i32
    %176 = arith.cmpi sgt, %166, %c0_i32_69 : i32
    %cst_70 = arith.constant 0.000000e+00 : f32
    %177 = vector.broadcast %cst_70 : f32 to vector<1x128xf32>
    %178 = arith.select %176, %175, %177 : vector<1x128xf32>
    %c8_i32_71 = arith.constant 8 : i32
    %179 = arith.muli %arg0, %c8_i32_71 : i32
    %c6_i32 = arith.constant 6 : i32
    %180 = arith.addi %179, %c6_i32 : i32
    %181 = arith.index_cast %180 : i32 to index
    %182 = memref.load %arg1[%181] : memref<16xi32, #tpu.memory_space<smem>>
    %183 = vector.extract_strided_slice %81 {offsets = [48, 0], sizes = [8, 128], strides = [1, 1]} : vector<64x128xf32> to vector<8x128xf32>
    %184 = vector.broadcast %182 : i32 to vector<8x1xi32>
    %185 = arith.cmpi slt, %82, %184 : vector<8x1xi32>
    %cst_72 = arith.constant -3.40282347E+38 : f32
    %186 = vector.shape_cast %185 : vector<8x1xi1> to vector<8x1xi1>
    %187 = vector.broadcast %186 : vector<8x1xi1> to vector<8x128xi1>
    %188 = vector.broadcast %cst_72 : f32 to vector<8x128xf32>
    %189 = arith.select %187, %183, %188 : vector<8x128xi1>, vector<8x128xf32>
    %cst_73 = arith.constant dense<0xFF800000> : vector<128xf32>
    %190 = vector.multi_reduction <maximumf>, %189, %cst_73 [0] : vector<8x128xf32> to vector<128xf32>
    %191 = vector.shape_cast %190 : vector<128xf32> to vector<1x128xf32>
    %c0_i32_74 = arith.constant 0 : i32
    %192 = arith.cmpi sgt, %182, %c0_i32_74 : i32
    %cst_75 = arith.constant 0.000000e+00 : f32
    %193 = vector.broadcast %cst_75 : f32 to vector<1x128xf32>
    %194 = arith.select %192, %191, %193 : vector<1x128xf32>
    %c8_i32_76 = arith.constant 8 : i32
    %195 = arith.muli %arg0, %c8_i32_76 : i32
    %c7_i32 = arith.constant 7 : i32
    %196 = arith.addi %195, %c7_i32 : i32
    %197 = arith.index_cast %196 : i32 to index
    %198 = memref.load %arg1[%197] : memref<16xi32, #tpu.memory_space<smem>>
    %199 = vector.extract_strided_slice %81 {offsets = [56, 0], sizes = [8, 128], strides = [1, 1]} : vector<64x128xf32> to vector<8x128xf32>
    %200 = vector.broadcast %198 : i32 to vector<8x1xi32>
    %201 = arith.cmpi slt, %82, %200 : vector<8x1xi32>
    %cst_77 = arith.constant -3.40282347E+38 : f32
    %202 = vector.shape_cast %201 : vector<8x1xi1> to vector<8x1xi1>
    %203 = vector.broadcast %202 : vector<8x1xi1> to vector<8x128xi1>
    %204 = vector.broadcast %cst_77 : f32 to vector<8x128xf32>
    %205 = arith.select %203, %199, %204 : vector<8x128xi1>, vector<8x128xf32>
    %cst_78 = arith.constant dense<0xFF800000> : vector<128xf32>
    %206 = vector.multi_reduction <maximumf>, %205, %cst_78 [0] : vector<8x128xf32> to vector<128xf32>
    %207 = vector.shape_cast %206 : vector<128xf32> to vector<1x128xf32>
    %c0_i32_79 = arith.constant 0 : i32
    %208 = arith.cmpi sgt, %198, %c0_i32_79 : i32
    %cst_80 = arith.constant 0.000000e+00 : f32
    %209 = vector.broadcast %cst_80 : f32 to vector<1x128xf32>
    %210 = arith.select %208, %207, %209 : vector<1x128xf32>
    %211 = tpu.concatenate %98, %114, %130, %146, %162, %178, %194, %210 in 0 : vector<1x128xf32>, vector<1x128xf32>, vector<1x128xf32>, vector<1x128xf32>, vector<1x128xf32>, vector<1x128xf32>, vector<1x128xf32>, vector<1x128xf32> -> vector<8x128xf32>
    %c0_81 = arith.constant 0 : index
    %c0_82 = arith.constant 0 : index
    %212 = vector.load %arg13[%c0_81, %c0_82] : memref<128x32xf32, #tpu.memory_space<vmem>>, vector<128x32xf32>
    %cst_83 = arith.constant dense<0.000000e+00> : vector<8x32xf32>
    %213 = tpu.matmul %211, %212, %cst_83 {dimension_numbers = #tpu.dot_dimension_numbers<[1], [0], [0], [1], [0, 0, 1, 1], [], []>} : vector<8x128xf32>, vector<128x32xf32>, vector<8x32xf32> -> vector<8x32xf32>
    %c0_84 = arith.constant 0 : index
    %c0_85 = arith.constant 0 : index
    %214 = vector.load %arg14[%c0_84, %c0_85] : memref<1x32xf32, #tpu.memory_space<vmem>>, vector<1x32xf32>
    %215 = vector.broadcast %214 : vector<1x32xf32> to vector<8x32xf32>
    %216 = arith.addf %213, %215 : vector<8x32xf32>
    %cst_86 = arith.constant 0.000000e+00 : f32
    %217 = vector.broadcast %cst_86 : f32 to vector<8x32xf32>
    %218 = arith.maximumf %216, %217 : vector<8x32xf32>
    %c0_87 = arith.constant 0 : index
    %c0_88 = arith.constant 0 : index
    %219 = vector.load %arg15[%c0_87, %c0_88] : memref<1x32xf32, #tpu.memory_space<vmem>>, vector<1x32xf32>
    %220 = vector.broadcast %219 : vector<1x32xf32> to vector<8x32xf32>
    %221 = arith.mulf %218, %220 : vector<8x32xf32>
    %cst_89 = arith.constant dense<0.000000e+00> : vector<8xf32>
    %222 = vector.multi_reduction <add>, %221, %cst_89 [1] : vector<8x32xf32> to vector<8xf32>
    %223 = vector.shape_cast %222 : vector<8xf32> to vector<8x1xf32>
    %c0_90 = arith.constant 0 : index
    %c0_91 = arith.constant 0 : index
    %224 = vector.load %arg16[%c0_90, %c0_91] : memref<1x1xf32, #tpu.memory_space<vmem>>, vector<1x1xf32>
    %225 = vector.broadcast %224 : vector<1x1xf32> to vector<8x1xf32>
    %226 = arith.addf %223, %225 : vector<8x1xf32>
    %c0_92 = arith.constant 0 : index
    %c0_93 = arith.constant 0 : index
    %227 = vector.load %arg17[%c0_92, %c0_93] : memref<8x1xf32, #tpu.memory_space<vmem>>, vector<8x1xf32>
    tpu.vector_store %arg17[%c0_92, %c0_93], %226 {strides = array<i32>} : memref<8x1xf32, #tpu.memory_space<vmem>>, vector<8x1xf32>,
    return
  }
  func.func @transform_0(%arg0: i32, %arg1: memref<16xi32, #tpu.memory_space<smem>>) -> (i32, i32) {
    %c0_i32 = arith.constant 0 : i32
    %c0_i32_0 = arith.constant 0 : i32
    return %arg0, %c0_i32 : i32, i32
  }
  func.func @transform_1(%arg0: i32, %arg1: memref<16xi32, #tpu.memory_space<smem>>) -> (i32, i32) {
    %c0_i32 = arith.constant 0 : i32
    %c0_i32_0 = arith.constant 0 : i32
    %c0_i32_1 = arith.constant 0 : i32
    return %c0_i32, %c0_i32_0 : i32, i32
  }
  func.func @transform_2(%arg0: i32, %arg1: memref<16xi32, #tpu.memory_space<smem>>) -> (i32, i32, i32) {
    %c0_i32 = arith.constant 0 : i32
    %c0_i32_0 = arith.constant 0 : i32
    %c0_i32_1 = arith.constant 0 : i32
    return %arg0, %c0_i32, %c0_i32_0 : i32, i32, i32
  }
  func.func @transform_3(%arg0: i32, %arg1: memref<16xi32, #tpu.memory_space<smem>>) -> (i32, i32) {
    %c0_i32 = arith.constant 0 : i32
    %c0_i32_0 = arith.constant 0 : i32
    %c0_i32_1 = arith.constant 0 : i32
    return %c0_i32, %c0_i32_0 : i32, i32
  }
  func.func @transform_4(%arg0: i32, %arg1: memref<16xi32, #tpu.memory_space<smem>>) -> (i32, i32) {
    %c0_i32 = arith.constant 0 : i32
    %c0_i32_0 = arith.constant 0 : i32
    %c0_i32_1 = arith.constant 0 : i32
    return %c0_i32, %c0_i32_0 : i32, i32
  }
  func.func @transform_5(%arg0: i32, %arg1: memref<16xi32, #tpu.memory_space<smem>>) -> (i32, i32) {
    %c0_i32 = arith.constant 0 : i32
    %c0_i32_0 = arith.constant 0 : i32
    %c0_i32_1 = arith.constant 0 : i32
    return %c0_i32, %c0_i32_0 : i32, i32
  }
  func.func @transform_6(%arg0: i32, %arg1: memref<16xi32, #tpu.memory_space<smem>>) -> (i32, i32) {
    %c0_i32 = arith.constant 0 : i32
    %c0_i32_0 = arith.constant 0 : i32
    %c0_i32_1 = arith.constant 0 : i32
    return %c0_i32, %c0_i32_0 : i32, i32
  }
  func.func @transform_7(%arg0: i32, %arg1: memref<16xi32, #tpu.memory_space<smem>>) -> (i32, i32) {
    %c0_i32 = arith.constant 0 : i32
    %c0_i32_0 = arith.constant 0 : i32
    %c0_i32_1 = arith.constant 0 : i32
    return %c0_i32, %c0_i32_0 : i32, i32
  }
  func.func @transform_8(%arg0: i32, %arg1: memref<16xi32, #tpu.memory_space<smem>>) -> (i32, i32) {
    %c0_i32 = arith.constant 0 : i32
    %c0_i32_0 = arith.constant 0 : i32
    %c0_i32_1 = arith.constant 0 : i32
    return %c0_i32, %c0_i32_0 : i32, i32
  }
  func.func @transform_9(%arg0: i32, %arg1: memref<16xi32, #tpu.memory_space<smem>>) -> (i32, i32) {
    %c0_i32 = arith.constant 0 : i32
    %c0_i32_0 = arith.constant 0 : i32
    %c0_i32_1 = arith.constant 0 : i32
    return %c0_i32, %c0_i32_0 : i32, i32
  }
  func.func @transform_10(%arg0: i32, %arg1: memref<16xi32, #tpu.memory_space<smem>>) -> (i32, i32) {
    %c0_i32 = arith.constant 0 : i32
    %c0_i32_0 = arith.constant 0 : i32
    %c0_i32_1 = arith.constant 0 : i32
    return %c0_i32, %c0_i32_0 : i32, i32
  }
  func.func @transform_11(%arg0: i32, %arg1: memref<16xi32, #tpu.memory_space<smem>>) -> (i32, i32) {
    %c0_i32 = arith.constant 0 : i32
    %c0_i32_0 = arith.constant 0 : i32
    %c0_i32_1 = arith.constant 0 : i32
    return %c0_i32, %c0_i32_0 : i32, i32
  }
  func.func @transform_12(%arg0: i32, %arg1: memref<16xi32, #tpu.memory_space<smem>>) -> (i32, i32) {
    %c0_i32 = arith.constant 0 : i32
    %c0_i32_0 = arith.constant 0 : i32
    %c0_i32_1 = arith.constant 0 : i32
    return %c0_i32, %c0_i32_0 : i32, i32
  }
  func.func @transform_13(%arg0: i32, %arg1: memref<16xi32, #tpu.memory_space<smem>>) -> (i32, i32) {
    %c0_i32 = arith.constant 0 : i32
    %c0_i32_0 = arith.constant 0 : i32
    %c0_i32_1 = arith.constant 0 : i32
    return %c0_i32, %c0_i32_0 : i32, i32
  }
  func.func @transform_14(%arg0: i32, %arg1: memref<16xi32, #tpu.memory_space<smem>>) -> (i32, i32) {
    %c0_i32 = arith.constant 0 : i32
    %c0_i32_0 = arith.constant 0 : i32
    %c0_i32_1 = arith.constant 0 : i32
    return %c0_i32, %c0_i32_0 : i32, i32
  }
  func.func @transform_15(%arg0: i32, %arg1: memref<16xi32, #tpu.memory_space<smem>>) -> (i32, i32) {
    %c0_i32 = arith.constant 0 : i32
    %c0_i32_0 = arith.constant 0 : i32
    return %arg0, %c0_i32 : i32, i32
  }
}

</mosaic_0001>

<bundles_post_ra>
// kernel: gconvnet_forward.1
= control target key start
LH: loop header
LB: loop body
LE: loop exit
PB: predicated region body
PF: predicated region fallthrough
CT: control target
= control target key end

     0   :  { %s3638_s0 = inlined_call_operand.vmem [shape: s32[16], index: 0, kind: input, shape index: {}]   ;;  %s3639_s1 = inlined_call_operand.vmem [shape: f32[128,128], index: 1, kind: input, shape index: {}]   ;;  %s3640_s2 = inlined_call_operand.vmem [shape: f32[1,128], index: 2, kind: input, shape index: {}]   ;;  %s3641_s3 = inlined_call_operand.vmem [shape: f32[2,64,64], index: 3, kind: input, shape index: {}]   ;;  %s3642_s4 = inlined_call_operand.vmem [shape: f32[128,128], index: 4, kind: input, shape index: {}]   ;;  %s3643_s5 = inlined_call_operand.vmem [shape: f32[1,128], index: 5, kind: input, shape index: {}]   ;;  %s3644_s6 = inlined_call_operand.vmem [shape: f32[128,128], index: 6, kind: input, shape index: {}]   ;;  %s3645_s7 = inlined_call_operand.vmem [shape: f32[1,128], index: 7, kind: input, shape index: {}]   ;;  %s3646_s8 = inlined_call_operand.vmem [shape: f32[128,128], index: 8, kind: input, shape index: {}]   ;;  %s3647_s9 = inlined_call_operand.vmem [shape: f32[1,128], index: 9, kind: input, shape index: {}]   ;;  %s3648_s10 = inlined_call_operand.vmem [shape: f32[128,128], index: 10, kind: input, shape index: {}]   ;;  %s3649_s11 = inlined_call_operand.vmem [shape: f32[1,128], index: 11, kind: input, shape index: {}]   ;;  %s3650_s12 = inlined_call_operand.vmem [shape: f32[128,32], index: 12, kind: input, shape index: {}]   ;;  %s3651_s13 = inlined_call_operand.vmem [shape: f32[1,32], index: 13, kind: input, shape index: {}]   ;;  %s3652_s14 = inlined_call_operand.vmem [shape: f32[1,32], index: 14, kind: input, shape index: {}]   ;;  %s3653_s16 = inlined_call_operand.vmem [shape: f32[16,1], index: 16, kind: output, shape index: {}]   ;;  %s3654_s15 = inlined_call_operand.<no memory space> [shape: f32[1,1], index: 15, kind: input, shape index: {}]  }
   0x1   :  { %3655 = sst [smem:[#allocation6_spill]] %s3638_s0  ;;  %v25_v0 = vstv %s3654_s15 }
   0x2   :  { %3656 = sst [smem:[#allocation7_spill]] %s3647_s9  ;;  %26 = vst [vmem:[#allocation4] sm:$0x1] %v25_v0 }
   0x3   :  { %s3657_s23 = sld [smem:[#allocation6_spill]] }
   0x9   :  { %s21_s9 = sshll.u32 %s3657_s23, 4  ;;  %s22_s9 = int_to_ptr.vmem [resolvable:$true] %s21_s9 }
   0xa   :  { %s2721_s26 = scalar_lea.vmem %s22_s9, 16  ;;  %p2726_p1 = scmp.lt.s32.totalorder %s22_s9, %s22_s9 }
   0xb   :  { %p2722_p0 = scmp.ne.s32.totalorder %s22_s9, %s2721_s26  ;;  %p2727_p2 = scmp.lt.s32.totalorder %s2721_s26, %s2721_s26 }
   0xd   :  { %p2728_p3 = por %p2727_p2, %p2726_p1 }
   0xf   :  { %p2729_p4 = pnand %p2728_p3, %p2722_p0 }
  0x11   :  { %2732 = shalt.err (!%p2729_p4)  }
  0x12   :  { %s2743_s27 = smov [#allocation3]  }
  0x13   :  { %24 = dma.vmem_to_smem %s22_s9, 16, %s2743_s27, [#allocation2] }
  0x14   :  { %2737 = dma.done.wait [#allocation2], 16 }
  0x15   :  { %2738 = vsyncadd [#allocation2], 4294967280 }
  0x16   :  { %28 = sfence }
  0x17   :  { %s2838_s28 = smov 0  }
  0x18 LB: > { %s2122_s15 = sadd.s32 4294967295, %s2741_s28   ;;  %p2126_p5 = scmp.ge.s32.totalorder %s2741_s28, 1  ;;  %s2741_s28 = sphi %s2838_s28, %s34_s28  }
  0x19   : > { %p457_p6 = scmp.lt.s32.totalorder %s2741_s28, 3 }
  0x1b   : > { %p458_p7 = pnand %p2126_p5, %p457_p6 }
  0x1c   : > { %s2852_s17 = sshll.u32 (!%p458_p7), %s2122_s15, 3  ;;  %p515_p9 = scmp.lt.s32.totalorder (!%p458_p7), %s2122_s15, 1 }
  0x1d   : > { %461 = sbr.rel (%p458_p7) target bundleno = 2134 (0x856), region = 80  ;;  %p510_p8 = scmp.lt.s32.totalorder (!%p458_p7), %s2852_s17, 15 }
  0x1e   : > { %s1801_s26 = sadd.s32 (!%p458_p7), 1, %s2852_s17  ;;  %s1819_s29 = sadd.s32 (!%p458_p7), 2, %s2852_s17 }
  0x1f   : > { %s3447_s27 = sld [smem:[#allocation3 + %s1801_s26]] (!%p458_p7)  ;;  %s1855_s22 = sadd.s32 (!%p458_p7), 4, %s2852_s17 }
  0x20   : > { %s3451_s9 = sld [smem:[#allocation3 + %s2852_s17]] (!%p458_p7)  ;;  %s1909_s25 = sadd.s32 (!%p458_p7), 7, %s2852_s17 }
  0x21   : > { %s3456_s18 = sld [smem:[#allocation3 + %s1819_s29]] (!%p458_p7) }
  0x22   : > { %v722_v1 = vld [vmem:[%s3642_s4 + $0x78] sm:$0xff]  ;;  %v721_v2 = vld [vmem:[%s3642_s4 + $0x70] sm:$0xff]  ;;  %v535_v3 = vlaneseq  ;;  %v720_v4 = vld [vmem:[%s3642_s4 + $0x68] sm:$0xff]  ;;  %s511_s20 = scalar_select %p510_p8, %s2852_s17, 15  ;;  %v2744_v13 = vmov 0   ;;  %v2745_v20 = vmov 0.0  }
  0x23   : > { %2368 = vmatprep.subr.mxu0 %v722_v1  ;;  %v719_v6 = vld [vmem:[%s3642_s4 + $0x60] sm:$0xff]  ;;  %s3688_s15 = smov (!%p515_p9, %s2122_s15), 1  ;;  %v718_v9 = vld [vmem:[%s3642_s4 + $0x58] sm:$0xff]  ;;  %v717_v17 = vld [vmem:[%s3642_s4 + $0x50] sm:$0xff]  ;;  %vm644_vm8 = vcmask 523264   ;;  %s3493_s26 = sld [smem:[#allocation3 + %s1909_s25]] }
  0x24   : > { %2369 = vmatpush3.msra.mxu0 %v722_v1  ;;  %v2858_v5 = vshrl.u32 %v535_v3, 7  ;;  %s2128_s23 = sshll.u32 %s511_s20, 3  ;;  %v532_v8 = vld [vmem:[%s3640_s2] sm:$0x1]  ;;  %v2880_v11 = vand.u32 127, %v535_v3  ;;  %s2190_s0 = sshll.u32 %s3688_s15, 6 }
  0x25   : > { %2370 = vmatprep.subr.mxu0 %v721_v2  ;;  %s2876_s30 = scalar_lea.vmem %s3639_s1, %s2128_s23  ;;  %vm533_vm0 = vcmp.ge.f32.partialorder %v532_v8, 0.0  ;;  %vm564_vm1 = vcmp.eq.f32.partialorder %v532_v8, -1.0  ;;  %v716_v22 = vld [vmem:[%s3642_s4 + $0x48] sm:$0xff]  ;;  %s2904_s24 = scalar_lea.vmem %s3641_s3, %s2190_s0  ;;  %v715_v27 = vld [vmem:[%s3642_s4 + $0x40] sm:$0xff]  ;;  %v714_v31 = vld [vmem:[%s3642_s4 + $0x38] sm:$0xff] }
  0x26   : > { %2371 = vmatpush3.msra.mxu0 %v721_v2  ;;  %v537_v7 = vsub.s32 0, %v2858_v5  ;;  %v524_v12 = vld [vmem:[%s2876_s30] sm:$0xff]  ;;  %v565_v14 = vsel %vm564_vm1, 1, %v2744_v13  ;;  %v579_v15 = vsel %vm533_vm0, 1, %v2744_v13  ;;  %v604_v16 = vadd.s32 16, %v2858_v5  ;;  %v595_v32 = vld [vmem:[%s2904_s24 + $0x10] sm:$0xff] }
  0x27   : > { %2372 = vmatprep.subr.mxu0 %v720_v4  ;;  %vm612_vm5 = vcmp.eq.s32.totalorder %v2858_v5, %v2880_v11  ;;  %v603_v25 = vadd.s32 8, %v2858_v5  ;;  %v593_v29 = vld [vmem:[%s2904_s24] sm:$0xff]  ;;  %v594_v34 = vld [vmem:[%s2904_s24 + $0x8] sm:$0xff]  ;;  %v713_v35 = vld [vmem:[%s3642_s4 + $0x30] sm:$0xff]  ;;  %v605_v39 = vadd.s32 24, %v2858_v5  ;;  %v606_v44 = vadd.s32 32, %v2858_v5 }
  0x28   : > { %2373 = vmatpush3.msra.mxu0 %v720_v4  ;;  %v2878_v10 = vrot.slane %v532_v8, %v537_v7  ;;  %v569_v18 = vrot.slane %v565_v14, %v537_v7  ;;  %v583_v19 = vrot.slane %v579_v15, %v537_v7  ;;  %vm614_vm6 = vcmp.eq.s32.totalorder %v604_v16, %v2880_v11  ;;  %v712_v40 = vld [vmem:[%s3642_s4 + $0x28] sm:$0xff]  ;;  %v596_v43 = vld [vmem:[%s2904_s24 + $0x18] sm:$0xff]  ;;  %v597_v47 = vld [vmem:[%s2904_s24 + $0x20] sm:$0xff]  ;;  %s3662_s20 = sld [smem:[#allocation7_spill]]  ;;  %p1796_p10 = scmp.gt.s32.totalorder %s3451_s9, 0 }
  0x29   : > { %2374 = vmatprep.subr.mxu0 %v719_v6  ;;  %v2140_v30 = vsel %vm612_vm5, 1.0, %v2745_v20  ;;  %v2142_v33 = vsel %vm614_vm6, 1.0, %v2745_v20  ;;  %vm613_vm7 = vcmp.eq.s32.totalorder %v603_v25, %v2880_v11  ;;  %v607_v45 = vadd.s32 40, %v2858_v5  ;;  %v598_v48 = vld [vmem:[%s2904_s24 + $0x28] sm:$0xff]  ;;  %v711_v51 = vld [vmem:[%s3642_s4 + $0x20] sm:$0xff]  ;;  %v599_v59 = vld [vmem:[%s2904_s24 + $0x30] sm:$0xff] }
  0x2a   : > { %2375 = vmatpush3.msra.mxu0 %v719_v6  ;;  %vm540_vm2 = vcmp.eq.f32.partialorder %v524_v12, %v2878_v10  ;;  %vm2893_vm3 = vcmp.eq.s32.totalorder %v569_v18, 1  ;;  %vm2897_vm4 = vcmp.eq.s32.totalorder %v583_v19, 1  ;;  %v2929_v36 = vmax.f32 %v593_v29, %v2140_v30  ;;  %v525_v54 = vld [vmem:[%s2876_s30 + $0x8] sm:$0xff]  ;;  %v710_v60 = vld [vmem:[%s3642_s4 + $0x18] sm:$0xff]  ;;  %v526_v61 = vld [vmem:[%s2876_s30 + $0x10] sm:$0xff]  ;;  %s3469_s23 = sld [smem:[#allocation3 + %s1855_s22]] }
  0x2b   : > { %2376 = vmatprep.subr.mxu0 %v718_v9  ;;  %v2132_v21 = vsel %vm540_vm2, 1.0, %v2745_v20  ;;  %v571_v26 = vsel %vm2893_vm3, %v524_v12, 0.0  ;;  %v2931_v37 = vmax.f32 %v595_v32, %v2142_v33  ;;  %v2141_v38 = vsel %vm613_vm7, 1.0, %v2745_v20  ;;  %v600_v0 = vld [vmem:[%s2904_s24 + $0x38] sm:$0xff]  ;;  %v709_v6 = vld [vmem:[%s3642_s4 + $0x10] sm:$0xff]  ;;  %v708_v14 = vld [vmem:[%s3642_s4 + $0x8] sm:$0xff] }
  0x2c   : > { %2377 = vmatpush3.msra.mxu0 %v718_v9  ;;  %v585_v28 = vsel %vm2897_vm4, %v2132_v21, %v571_v26  ;;  %v645_v41 = vsel %vm644_vm8, %v2929_v36, 0.0  ;;  %v2940_v42 = vmax.f32 %v594_v34, %v2141_v38  ;;  %vm615_vm9 = vcmp.eq.s32.totalorder %v605_v39, %v2880_v11  ;;  %v527_v9 = vld [vmem:[%s2876_s30 + $0x18] sm:$0xff]  ;;  %v528_v15 = vld [vmem:[%s2876_s30 + $0x20] sm:$0xff]  ;;  %v529_v26 = vld [vmem:[%s2876_s30 + $0x28] sm:$0xff]  ;;  %s1837_s24 = sadd.s32 3, %s2852_s17  ;;  %p1814_p11 = scmp.gt.s32.totalorder %s3447_s27, 0 }
  0x2d   : > { %2378 = vmatprep.subr.mxu0 %v717_v17  ;;  %2400 = vmatprep.mubr.f32.mxu0 %v585_v28  ;;  %v651_v46 = vsel %vm644_vm8, %v2931_v37, 0.0  ;;  %v608_v49 = vadd.s32 48, %v2858_v5  ;;  %v609_v50 = vadd.s32 56, %v2858_v5  ;;  %v2143_v53 = vsel %vm615_vm9, 1.0, %v2745_v20  ;;  %v707_v19 = vld [vmem:[%s3642_s4] sm:$0xff]  ;;  %v530_v30 = vld [vmem:[%s2876_s30 + $0x30] sm:$0xff] }
  0x2e   : > { %2379 = vmatpush3.msra.mxu0 %v717_v17  ;;  %646 = vadd.xlane.f32.xlu0 %v645_v41  ;;  %v648_v52 = vsel %vm644_vm8, %v2940_v42, 0.0  ;;  %vm616_vm10 = vcmp.eq.s32.totalorder %v606_v44, %v2880_v11  ;;  %vm617_vm11 = vcmp.eq.s32.totalorder %v607_v45, %v2880_v11  ;;  %v2961_v56 = vmax.f32 %v596_v43, %v2143_v53  ;;  %v531_v39 = vld [vmem:[%s2876_s30 + $0x38] sm:$0xff]  ;;  %s1873_s30 = sadd.s32 5, %s2852_s17  ;;  %s3454_s0 = sld [smem:[#allocation3 + %s1837_s24]] }
  0x2f   : > { %2380 = vmatprep.subr.mxu0 %v716_v22  ;;  %652 = vadd.xlane.f32.xlu1 %v651_v46  ;;  %v677_v55 = vadd.f32 %v648_v52, %v645_v41  ;;  %v2144_v57 = vsel %vm616_vm10, 1.0, %v2745_v20  ;;  %v2145_v58 = vsel %vm617_vm11, 1.0, %v2745_v20  ;;  %vm618_vm12 = vcmp.eq.s32.totalorder %v608_v49, %v2880_v11  ;;  %s3458_s19 = sld [smem:[#allocation3 + %s1873_s30]]  ;;  %s1891_s24 = sadd.s32 6, %s2852_s17 }
  0x30   : > { %2381 = vmatpush3.msra.mxu0 %v716_v22  ;;  %v2970_v62 = vmax.f32 %v597_v47, %v2144_v57  ;;  %v2972_v63 = vmax.f32 %v598_v48, %v2145_v58  ;;  %vm619_vm13 = vcmp.eq.s32.totalorder %v609_v50, %v2880_v11  ;;  %v654_v1 = vsel %vm644_vm8, %v2961_v56, 0.0  ;;  %s3527_s17 = sld [smem:[#allocation3 + %s1891_s24]]  ;;  %p1832_p12 = scmp.gt.s32.totalorder %s3456_s18, 0 }
  0x31   : > { %2382 = vmatprep.subr.mxu0 %v715_v27  ;;  %v678_v2 = vadd.f32 %v677_v55, %v651_v46  ;;  %v2146_v3 = vsel %vm618_vm12, 1.0, %v2745_v20  ;;  %v2147_v4 = vsel %vm619_vm13, 1.0, %v2745_v20  ;;  %vm541_vm14 = vcmp.eq.f32.partialorder %v525_v54, %v2878_v10  ;;  %s3539_s29 = scalar_select %p1796_p10, 1, 0 }
  0x32   : > { %2383 = vmatpush3.msra.mxu0 %v715_v27  ;;  %649 = vadd.xlane.f32.xlu0 %v648_v52  ;;  %v657_v7 = vsel %vm644_vm8, %v2970_v62, 0.0  ;;  %v2987_v8 = vmax.f32 %v599_v59, %v2146_v3  ;;  %vm542_vm15 = vcmp.eq.f32.partialorder %v526_v61, %v2878_v10  ;;  %v660_v12 = vsel %vm644_vm8, %v2972_v63, 0.0  ;;  %s3553_s30 = scalar_select %p1814_p11, 1, 0 }
  0x33   : > { %2384 = vmatprep.subr.mxu0 %v714_v31  ;;  %655 = vadd.xlane.f32.xlu1 %v654_v1  ;;  %v679_v11 = vadd.f32 %v678_v2, %v654_v1  ;;  %v2993_v13 = vmax.f32 %v600_v0, %v2147_v4  ;;  %v2133_v16 = vsel %vm541_vm14, 1.0, %v2745_v20  ;;  %v572_v17 = vsel %vm2893_vm3, %v525_v54, 0.0  ;;  %p1868_p0 = scmp.gt.s32.totalorder %s3469_s23, 0  ;;  %p1922_p3 = scmp.gt.s32.totalorder %s3493_s26, 0 }
  0x34   : > { %2385 = vmatpush3.msra.mxu0 %v714_v31  ;;  %v2134_v21 = vsel %vm542_vm15, 1.0, %v2745_v20  ;;  %v573_v22 = vsel %vm2893_vm3, %v526_v61, 0.0  ;;  %vm543_vm0 = vcmp.eq.f32.partialorder %v527_v9, %v2878_v10  ;;  %v663_v25 = vsel %vm644_vm8, %v2987_v8, 0.0  ;;  %p1850_p13 = scmp.gt.s32.totalorder %s3454_s0, 0 }
  0x35   : > { %2386 = vmatprep.subr.mxu0 %v713_v35  ;;  %v680_v18 = vadd.f32 %v679_v11, %v657_v7  ;;  %vm544_vm1 = vcmp.eq.f32.partialorder %v528_v15, %v2878_v10  ;;  %v666_v28 = vsel %vm644_vm8, %v2993_v13, 0.0  ;;  %v586_v29 = vsel %vm2897_vm4, %v2133_v16, %v572_v17  ;;  %p1886_p1 = scmp.gt.s32.totalorder %s3458_s19, 0 }
  0x36   : > { %2387 = vmatpush3.msra.mxu0 %v713_v35  ;;  %658 = vadd.xlane.f32.xlu0 %v657_v7  ;;  %v587_v31 = vsel %vm2897_vm4, %v2134_v21, %v573_v22  ;;  %v2135_v32 = vsel %vm543_vm0, 1.0, %v2745_v20  ;;  %v574_v33 = vsel %vm2893_vm3, %v527_v9, 0.0  ;;  %v2136_v35 = vsel %vm544_vm1, 1.0, %v2745_v20  ;;  %p1904_p2 = scmp.gt.s32.totalorder %s3527_s17, 0 }
  0x37   : > { %2388 = vmatprep.subr.mxu0 %v712_v40  ;;  %661 = vadd.xlane.f32.xlu1 %v660_v12  ;;  %v681_v27 = vadd.f32 %v680_v18, %v660_v12  ;;  %v575_v38 = vsel %vm2893_vm3, %v528_v15, 0.0  ;;  %vm545_vm2 = vcmp.eq.f32.partialorder %v529_v26, %v2878_v10  ;;  %vm546_vm5 = vcmp.eq.f32.partialorder %v530_v30, %v2878_v10 }
  0x38   : > { %2389 = vmatpush3.msra.mxu0 %v712_v40  ;;  %v588_v41 = vsel %vm2897_vm4, %v2135_v32, %v574_v33  ;;  %v589_v43 = vsel %vm2897_vm4, %v2136_v35, %v575_v38  ;;  %v2137_v44 = vsel %vm545_vm2, 1.0, %v2745_v20  ;;  %v576_v45 = vsel %vm2893_vm3, %v529_v26, 0.0  ;;  %v1002_v32 = vld [vmem:[%s3644_s6 + $0x70] sm:$0xff]  ;;  %v1001_v38 = vld [vmem:[%s3644_s6 + $0x68] sm:$0xff] }
  0x39   : > { %2390 = vmatprep.subr.mxu0 %v711_v51  ;;  %v682_v34 = vadd.f32 %v681_v27, %v663_v25  ;;  %v2138_v46 = vsel %vm546_vm5, 1.0, %v2745_v20  ;;  %v577_v47 = vsel %vm2893_vm3, %v530_v30, 0.0  ;;  %vm547_vm6 = vcmp.eq.f32.partialorder %v531_v39, %v2878_v10 }
  0x3a   : > { %2391 = vmatpush3.msra.mxu0 %v711_v51  ;;  %664 = vadd.xlane.f32.xlu0 %v663_v25  ;;  %v590_v48 = vsel %vm2897_vm4, %v2137_v44, %v576_v45  ;;  %v591_v49 = vsel %vm2897_vm4, %v2138_v46, %v577_v47  ;;  %v2139_v50 = vsel %vm547_vm6, 1.0, %v2745_v20  ;;  %v578_v51 = vsel %vm2893_vm3, %v531_v39, 0.0  ;;  %v997_v44 = vld [vmem:[%s3644_s6 + $0x48] sm:$0xff]  ;;  %v996_v45 = vld [vmem:[%s3644_s6 + $0x40] sm:$0xff]  ;;  %v995_v46 = vld [vmem:[%s3644_s6 + $0x38] sm:$0xff] }
  0x3b   : > { %2392 = vmatprep.subr.mxu0 %v710_v60  ;;  %667 = vadd.xlane.f32.xlu1 %v666_v28  ;;  %v683_v40 = vadd.f32 %v682_v34, %v666_v28  ;;  %v592_v52 = vsel %vm2897_vm4, %v2139_v50, %v578_v51  ;;  %v994_v47 = vld [vmem:[%s3644_s6 + $0x30] sm:$0xff]  ;;  %v991_v50 = vld [vmem:[%s3644_s6 + $0x18] sm:$0xff] }
  0x3c   : > { %2393 = vmatpush3.msra.mxu0 %v710_v60  ;;  %v990_v51 = vld [vmem:[%s3644_s6 + $0x10] sm:$0xff] }
  0x3d   : > { %2394 = vmatprep.subr.mxu0 %v709_v6  ;;  %v684_v10 = vrot.slane %v683_v40, 4 }
  0x3e   : > { %2395 = vmatpush3.msra.mxu0 %v709_v6 }
  0x3f   : > { %2396 = vmatprep.subr.mxu0 %v708_v14  ;;  %v685_v53 = vadd.f32 %v684_v10, %v683_v40  ;;  %v988_v10 = vld [vmem:[%s3644_s6] sm:$0xff] }
  0x40   : > { %2397 = vmatpush3.msra.mxu0 %v708_v14 }
  0x41   : > { %2398 = vmatprep.subr.mxu0 %v707_v19  ;;  %v686_v54 = vrot.slane %v685_v53, 2 }
  0x42   : > { %2399 = vmatpush3.msra.mxu0 %v707_v19 }
  0x43   : > { %2401 = vmatmul.mubr.f32.vlgmr.msra.gmra.mxu0 %v586_v29  ;;  %v687_v55 = vadd.f32 %v686_v54, %v685_v53  ;;  %v2148_v53 = vld [vmem:[%s3643_s5] ss:$0 sm:$0xff] }
  0x44   : > { %2403 = vmatprep.mubr.f32.mxu0 %v587_v31 }
  0x45   : > { %v688_v57 = vrot.slane %v687_v55, 1 }
  0x47   : > { %2404 = vmatmul.mubr.f32.gmra.mxu0 %v588_v41  ;;  %v689_v58 = vadd.f32 %v688_v57, %v687_v55  ;;  %v999_v41 = vld [vmem:[%s3644_s6 + $0x58] sm:$0xff] }
  0x48   : > { %2406 = vmatprep.mubr.f32.mxu0 %v589_v43  ;;  %v998_v43 = vld [vmem:[%s3644_s6 + $0x50] sm:$0xff] }
  0x49   : > { %2703 = vrsqrt.f32 %v689_v58 }
  0x4b   : > { %2407 = vmatmul.mubr.f32.gmra.mxu0 %v590_v48  ;;  %v993_v48 = vld [vmem:[%s3644_s6 + $0x28] sm:$0xff] }
  0x4c   : > { %2409 = vmatprep.mubr.f32.mxu0 %v591_v49  ;;  %v992_v49 = vld [vmem:[%s3644_s6 + $0x20] sm:$0xff] }
  0x4f   : > { %2410 = vmatmul.mubr.f32.gmra.mxu0 %v592_v52  ;;  %v989_v52 = vld [vmem:[%s3644_s6 + $0x8] sm:$0xff] }
  0x56   : > { %v3049_v60 = vpop.eup %2703 }
  0xb7   : > { %v647_v59 = vpop.xlane.xlu0 %646 }
  0xb8   : > { %2705 = vrsqrt.f32 %v647_v59  ;;  %v653_v24 = vpop.xlane.xlu1 %652 }
  0xbb   : > { %v650_v2 = vpop.xlane.xlu0 %649 }
  0xbc   : > { %v656_v4 = vpop.xlane.xlu1 %655  ;;  %2707 = vrsqrt.f32 %v650_v2 }
  0xbd   : > { %2709 = vrsqrt.f32 %v653_v24 }
  0xbe   : > { %2711 = vrsqrt.f32 %v656_v4 }
  0xbf   : > { %v659_v7 = vpop.xlane.xlu0 %658 }
  0xc0   : > { %v662_v12 = vpop.xlane.xlu1 %661  ;;  %2713 = vrsqrt.f32 %v659_v7 }
  0xc1   : > { %2715 = vrsqrt.f32 %v662_v12 }
  0xc3   : > { %v665_v14 = vpop.xlane.xlu0 %664 }
  0xc4   : > { %2717 = vrsqrt.f32 %v665_v14  ;;  %v668_v17 = vpop.xlane.xlu1 %667 }
  0xc5   : > { %v2706_v61 = vpop.eup %2705  ;;  %2719 = vrsqrt.f32 %v668_v17 }
  0xc6   : > { %v691_v23 = vmul.f32 %v2706_v61, %v2929_v36 }
  0xc8   : > { %v3053_v0 = vmul.f32 %v3049_v60, %v691_v23 }
  0xc9   : > { %v2708_v18 = vpop.eup %2707 }
  0xca   : > { %2428 = vmatprep.mubr.msk.f32.mxu1 %vm644_vm8, %v3053_v0  ;;  %v2710_v19 = vpop.eup %2709  ;;  %v692_v21 = vmul.f32 %v2708_v18, %v2940_v42 }
  0xcb   : > { %v2712_v22 = vpop.eup %2711  ;;  %v693_v25 = vmul.f32 %v2710_v19, %v2931_v37  ;;  %v1003_v37 = vld [vmem:[%s3644_s6 + $0x78] sm:$0xff] }
  0xcc   : > { %v3060_v27 = vmul.f32 %v3049_v60, %v692_v21  ;;  %v694_v28 = vmul.f32 %v2712_v22, %v2961_v56 }
  0xcd   : > { %v2714_v26 = vpop.eup %2713  ;;  %v3064_v30 = vmul.f32 %v3049_v60, %v693_v25 }
  0xce   : > { %v2716_v29 = vpop.eup %2715  ;;  %v695_v42 = vmul.f32 %v2714_v26, %v2970_v62  ;;  %v3076_v56 = vmul.f32 %v3049_v60, %v694_v28 }
  0xcf   : > { %v696_v33 = vmul.f32 %v2716_v29, %v2972_v63  ;;  %v1000_v63 = vld [vmem:[%s3644_s6 + $0x60] sm:$0xff] }
  0xd0   : > { %v3082_v34 = vmul.f32 %v3049_v60, %v695_v42 }
  0xd1   : > { %v2718_v31 = vpop.eup %2717  ;;  %v3094_v39 = vmul.f32 %v3049_v60, %v696_v33  ;;  %v1257_v33 = vld [vmem:[%s3646_s8 + $0x60] sm:$0xff] }
  0xd2   : > { %v2720_v62 = vpop.eup %2719  ;;  %v697_v35 = vmul.f32 %v2718_v31, %v2987_v8  ;;  %v1259_v31 = vld [vmem:[%s3646_s8 + $0x70] sm:$0xff] }
  0xd3   : > { %v698_v40 = vmul.f32 %v2720_v62, %v2993_v13  ;;  %v1256_v62 = vld [vmem:[%s3646_s8 + $0x58] sm:$0xff] }
  0xd4   : > { %v3100_v8 = vmul.f32 %v3049_v60, %v697_v35  ;;  %v1255_v35 = vld [vmem:[%s3646_s8 + $0x50] sm:$0xff] }
  0xd5   : > { %v3111_v13 = vmul.f32 %v3049_v60, %v698_v40  ;;  %v1252_v40 = vld [vmem:[%s3646_s8 + $0x38] sm:$0xff] }
 0x103   : > { %v2402_v1 = vpop.f32.mrf.mxu0 }
 0x105   : > { %v789_v3 = vpop.f32.mrf.mxu0 }
 0x107   : > { %v2405_v6 = vpop.f32.mrf.mxu0 }
 0x109   : > { %v799_v9 = vpop.f32.mrf.mxu0 }
 0x10b   : > { %v2408_v11 = vpop.f32.mrf.mxu0 }
 0x10d   : > { %v809_v36 = vpop.f32.mrf.mxu0 }
 0x10f   : > { %v2411_v15 = vpop.f32.mrf.mxu0 }
 0x110   : > { %2412 = vmatprep.subr.mxu1 %v2411_v15 }
 0x111   : > { %v819_v16 = vpop.f32.mrf.mxu0  ;;  %2413 = vmatpush3.msra.mxu1 %v2411_v15 }
 0x112   : > { %2414 = vmatprep.subr.mxu1 %v819_v16 }
 0x113   : > { %2415 = vmatpush3.msra.mxu1 %v819_v16 }
 0x114   : > { %2416 = vmatprep.subr.mxu1 %v2408_v11 }
 0x115   : > { %2417 = vmatpush3.msra.mxu1 %v2408_v11 }
 0x116   : > { %2418 = vmatprep.subr.mxu1 %v809_v36 }
 0x117   : > { %2419 = vmatpush3.msra.mxu1 %v809_v36 }
 0x118   : > { %2420 = vmatprep.subr.mxu1 %v2405_v6 }
 0x119   : > { %2421 = vmatpush3.msra.mxu1 %v2405_v6 }
 0x11a   : > { %2422 = vmatprep.subr.mxu1 %v799_v9 }
 0x11b   : > { %2423 = vmatpush3.msra.mxu1 %v799_v9 }
 0x11c   : > { %2424 = vmatprep.subr.mxu1 %v2402_v1 }
 0x11d   : > { %2425 = vmatpush3.msra.mxu1 %v2402_v1 }
 0x11e   : > { %2426 = vmatprep.subr.mxu1 %v789_v3 }
 0x11f   : > { %2427 = vmatpush3.msra.mxu1 %v789_v3 }
 0x120   : > { %2429 = vmatmul.mubr.msk.f32.vlgmr.msra.gmra.mxu1 %vm644_vm8, %v3060_v27  ;;  %2440 = vmatprep.subr.mxu1 %v1003_v37 }
 0x121   : > { %2431 = vmatprep.mubr.msk.f32.mxu1 %vm644_vm8, %v3064_v30  ;;  %2441 = vmatpush3.msra.mxu1 %v1003_v37  ;;  %v1260_v37 = vld [vmem:[%s3646_s8 + $0x78] sm:$0xff] }
 0x122   : > { %2442 = vmatprep.subr.mxu1 %v1002_v32  ;;  %2512 = vmatprep.subr.mxu0 %v1260_v37 }
 0x123   : > { %2443 = vmatpush3.msra.mxu1 %v1002_v32  ;;  %2513 = vmatpush3.msra.mxu0 %v1260_v37  ;;  %v1258_v32 = vld [vmem:[%s3646_s8 + $0x68] sm:$0xff] }
 0x124   : > { %2432 = vmatmul.mubr.msk.f32.gmra.mxu1 %vm644_vm8, %v3076_v56  ;;  %2444 = vmatprep.subr.mxu1 %v1001_v38 }
 0x125   : > { %2434 = vmatprep.mubr.msk.f32.mxu1 %vm644_vm8, %v3082_v34  ;;  %2445 = vmatpush3.msra.mxu1 %v1001_v38  ;;  %v1254_v38 = vld [vmem:[%s3646_s8 + $0x48] sm:$0xff] }
 0x126   : > { %2446 = vmatprep.subr.mxu1 %v1000_v63  ;;  %2514 = vmatprep.subr.mxu0 %v1259_v31 }
 0x127   : > { %2447 = vmatpush3.msra.mxu1 %v1000_v63  ;;  %2515 = vmatpush3.msra.mxu0 %v1259_v31  ;;  %v1253_v63 = vld [vmem:[%s3646_s8 + $0x40] sm:$0xff] }
 0x128   : > { %2435 = vmatmul.mubr.msk.f32.gmra.mxu1 %vm644_vm8, %v3094_v39  ;;  %2448 = vmatprep.subr.mxu1 %v999_v41 }
 0x129   : > { %2437 = vmatprep.mubr.msk.f32.mxu1 %vm644_vm8, %v3100_v8  ;;  %2449 = vmatpush3.msra.mxu1 %v999_v41  ;;  %v1251_v41 = vld [vmem:[%s3646_s8 + $0x30] sm:$0xff] }
 0x12a   : > { %2450 = vmatprep.subr.mxu1 %v998_v43  ;;  %2516 = vmatprep.subr.mxu0 %v1258_v32 }
 0x12b   : > { %2451 = vmatpush3.msra.mxu1 %v998_v43  ;;  %2517 = vmatpush3.msra.mxu0 %v1258_v32  ;;  %v1250_v43 = vld [vmem:[%s3646_s8 + $0x28] sm:$0xff] }
 0x12c   : > { %2438 = vmatmul.mubr.msk.f32.gmra.mxu1 %vm644_vm8, %v3111_v13  ;;  %2452 = vmatprep.subr.mxu1 %v997_v44 }
 0x12d   : > { %2453 = vmatpush3.msra.mxu1 %v997_v44  ;;  %2518 = vmatprep.subr.mxu0 %v1257_v33  ;;  %v1249_v44 = vld [vmem:[%s3646_s8 + $0x20] sm:$0xff] }
 0x12e   : > { %2454 = vmatprep.subr.mxu1 %v996_v45  ;;  %2519 = vmatpush3.msra.mxu0 %v1257_v33 }
 0x12f   : > { %2455 = vmatpush3.msra.mxu1 %v996_v45  ;;  %2520 = vmatprep.subr.mxu0 %v1256_v62 }
 0x130   : > { %2456 = vmatprep.subr.mxu1 %v995_v46  ;;  %2521 = vmatpush3.msra.mxu0 %v1256_v62 }
 0x131   : > { %2457 = vmatpush3.msra.mxu1 %v995_v46  ;;  %2522 = vmatprep.subr.mxu0 %v1255_v35 }
 0x132   : > { %2458 = vmatprep.subr.mxu1 %v994_v47  ;;  %2523 = vmatpush3.msra.mxu0 %v1255_v35 }
 0x133   : > { %2459 = vmatpush3.msra.mxu1 %v994_v47  ;;  %2524 = vmatprep.subr.mxu0 %v1254_v38 }
 0x134   : > { %2460 = vmatprep.subr.mxu1 %v993_v48  ;;  %2525 = vmatpush3.msra.mxu0 %v1254_v38 }
 0x135   : > { %2461 = vmatpush3.msra.mxu1 %v993_v48  ;;  %2526 = vmatprep.subr.mxu0 %v1253_v63 }
 0x136   : > { %2462 = vmatprep.subr.mxu1 %v992_v49  ;;  %2527 = vmatpush3.msra.mxu0 %v1253_v63 }
 0x137   : > { %2463 = vmatpush3.msra.mxu1 %v992_v49  ;;  %2528 = vmatprep.subr.mxu0 %v1252_v40 }
 0x138   : > { %2464 = vmatprep.subr.mxu1 %v991_v50  ;;  %2529 = vmatpush3.msra.mxu0 %v1252_v40 }
 0x139   : > { %2465 = vmatpush3.msra.mxu1 %v991_v50  ;;  %2530 = vmatprep.subr.mxu0 %v1251_v41 }
 0x13a   : > { %2466 = vmatprep.subr.mxu1 %v990_v51  ;;  %2531 = vmatpush3.msra.mxu0 %v1251_v41 }
 0x13b   : > { %2467 = vmatpush3.msra.mxu1 %v990_v51  ;;  %2532 = vmatprep.subr.mxu0 %v1250_v43 }
 0x13c   : > { %2468 = vmatprep.subr.mxu1 %v989_v52  ;;  %2533 = vmatpush3.msra.mxu0 %v1250_v43 }
 0x13d   : > { %2469 = vmatpush3.msra.mxu1 %v989_v52  ;;  %2534 = vmatprep.subr.mxu0 %v1249_v44 }
 0x13e   : > { %2470 = vmatprep.subr.mxu1 %v988_v10  ;;  %2535 = vmatpush3.msra.mxu0 %v1249_v44 }
 0x13f   : > { %2471 = vmatpush3.msra.mxu1 %v988_v10  ;;  %v1248_v10 = vld [vmem:[%s3646_s8 + $0x18] sm:$0xff] }
 0x140   : > { %2536 = vmatprep.subr.mxu0 %v1248_v10 }
 0x141   : > { %2537 = vmatpush3.msra.mxu0 %v1248_v10  ;;  %v1523_v10 = vld [vmem:[%s3648_s10 + $0x68] sm:$0xff] }
 0x1e0   : > { %v2430_v54 = vpop.f32.mrf.mxu1 }
 0x1e1   : > { %v931_v55 = vadd.f32 %v2430_v54, %v2148_v53  ;;  %v1246_v54 = vld [vmem:[%s3646_s8 + $0x8] sm:$0xff] }
 0x1e2   : > { %v925_v57 = vpop.f32.mrf.mxu1 }
 0x1e3   : > { %v926_v58 = vadd.f32 %v2148_v53, %v925_v57  ;;  %v973_v59 = vmul.f32 0.01, %v931_v55  ;;  %vm965_vm3 = vcmp.ge.f32.partialorder %v931_v55, 0.0  ;;  %v2157_v57 = vld [vmem:[%s3645_s7] ss:$0 sm:$0xff] }
 0x1e4   : > { %v2433_v60 = vpop.f32.mrf.mxu1 }
 0x1e5   : > { %v972_v61 = vmul.f32 0.01, %v926_v58  ;;  %v941_v23 = vadd.f32 %v2433_v60, %v2148_v53  ;;  %vm964_vm4 = vcmp.ge.f32.partialorder %v926_v58, 0.0  ;;  %v3152_v3 = vsel %vm965_vm3, %v931_v55, %v973_v59  ;;  %v1245_v55 = vld [vmem:[%s3646_s8] sm:$0xff] }
 0x1e6   : > { %v935_v24 = vpop.f32.mrf.mxu1 }
 0x1e7   : > { %v936_v1 = vadd.f32 %v2148_v53, %v935_v24  ;;  %v3150_v2 = vsel %vm964_vm4, %v926_v58, %v972_v61  ;;  %v975_v4 = vmul.f32 0.01, %v941_v23  ;;  %vm967_vm9 = vcmp.ge.f32.partialorder %v941_v23, 0.0 }
 0x1e8   : > { %v2436_v6 = vpop.f32.mrf.mxu1  ;;  %2472 = vmatprep.mubr.f32.mxu1 %v3150_v2 }
 0x1e9   : > { %v974_v7 = vmul.f32 0.01, %v936_v1  ;;  %v951_v9 = vadd.f32 %v2436_v6, %v2148_v53  ;;  %2473 = vmatmul.mubr.f32.vlgmr.msra.gmra.mxu1 %v3152_v3  ;;  %vm966_vm7 = vcmp.ge.f32.partialorder %v936_v1, 0.0  ;;  %v3159_v16 = vsel %vm967_vm9, %v941_v23, %v975_v4 }
 0x1ea   : > { %v945_v11 = vpop.f32.mrf.mxu1 }
 0x1eb   : > { %v946_v12 = vadd.f32 %v2148_v53, %v945_v11  ;;  %v3156_v36 = vsel %vm966_vm7, %v936_v1, %v974_v7  ;;  %v977_v14 = vmul.f32 0.01, %v951_v9  ;;  %vm969_vm11 = vcmp.ge.f32.partialorder %v951_v9, 0.0 }
 0x1ec   : > { %v2439_v15 = vpop.f32.mrf.mxu1  ;;  %2475 = vmatprep.mubr.f32.mxu1 %v3156_v36 }
 0x1ed   : > { %v976_v17 = vmul.f32 0.01, %v946_v12  ;;  %v961_v18 = vadd.f32 %v2439_v15, %v2148_v53  ;;  %2476 = vmatmul.mubr.f32.gmra.mxu1 %v3159_v16  ;;  %vm968_vm10 = vcmp.ge.f32.partialorder %v946_v12, 0.0  ;;  %v3165_v26 = vsel %vm969_vm11, %v951_v9, %v977_v14 }
 0x1ee   : > { %v955_v19 = vpop.f32.mrf.mxu1 }
 0x1ef   : > { %v956_v21 = vadd.f32 %v2148_v53, %v955_v19  ;;  %v3162_v22 = vsel %vm968_vm10, %v946_v12, %v976_v17  ;;  %v979_v25 = vmul.f32 0.01, %v961_v18  ;;  %vm971_vm13 = vcmp.ge.f32.partialorder %v961_v18, 0.0  ;;  %v1247_v53 = vld [vmem:[%s3646_s8 + $0x10] sm:$0xff] }
 0x1f0   : > { %2478 = vmatprep.mubr.f32.mxu1 %v3162_v22  ;;  %2538 = vmatprep.subr.mxu0 %v1247_v53 }
 0x1f1   : > { %v978_v28 = vmul.f32 0.01, %v956_v21  ;;  %2479 = vmatmul.mubr.f32.gmra.mxu1 %v3165_v26  ;;  %vm970_vm12 = vcmp.ge.f32.partialorder %v956_v21, 0.0  ;;  %v3171_v42 = vsel %vm971_vm13, %v961_v18, %v979_v25  ;;  %2539 = vmatpush3.msra.mxu0 %v1247_v53  ;;  %v1522_v53 = vld [vmem:[%s3648_s10 + $0x60] sm:$0xff] }
 0x1f2   : > { %2540 = vmatprep.subr.mxu0 %v1246_v54 }
 0x1f3   : > { %v3168_v29 = vsel %vm970_vm12, %v956_v21, %v978_v28  ;;  %2541 = vmatpush3.msra.mxu0 %v1246_v54  ;;  %v1521_v54 = vld [vmem:[%s3648_s10 + $0x58] sm:$0xff] }
 0x1f4   : > { %2481 = vmatprep.mubr.f32.mxu1 %v3168_v29  ;;  %2542 = vmatprep.subr.mxu0 %v1245_v55 }
 0x1f5   : > { %2482 = vmatmul.mubr.f32.gmra.mxu1 %v3171_v42  ;;  %2543 = vmatpush3.msra.mxu0 %v1245_v55  ;;  %v1520_v55 = vld [vmem:[%s3648_s10 + $0x50] sm:$0xff] }
 0x1f6   : > { %2500 = vmatprep.mubr.msk.f32.mxu1 %vm644_vm8, %v3053_v0 }
 0x2a9   : > { %v2474_v45 = vpop.f32.mrf.mxu1 }
 0x2ab   : > { %v1070_v46 = vpop.f32.mrf.mxu1 }
 0x2ad   : > { %v2477_v47 = vpop.f32.mrf.mxu1 }
 0x2af   : > { %v1080_v48 = vpop.f32.mrf.mxu1 }
 0x2b1   : > { %v2480_v49 = vpop.f32.mrf.mxu1 }
 0x2b3   : > { %v1090_v50 = vpop.f32.mrf.mxu1 }
 0x2b5   : > { %v2483_v51 = vpop.f32.mrf.mxu1 }
 0x2b6   : > { %2484 = vmatprep.subr.mxu1 %v2483_v51 }
 0x2b7   : > { %v1100_v52 = vpop.f32.mrf.mxu1  ;;  %2485 = vmatpush3.msra.mxu1 %v2483_v51 }
 0x2b8   : > { %2486 = vmatprep.subr.mxu1 %v1100_v52 }
 0x2b9   : > { %2487 = vmatpush3.msra.mxu1 %v1100_v52  ;;  %v1524_v52 = vld [vmem:[%s3648_s10 + $0x70] sm:$0xff] }
 0x2ba   : > { %2488 = vmatprep.subr.mxu1 %v2480_v49 }
 0x2bb   : > { %2489 = vmatpush3.msra.mxu1 %v2480_v49 }
 0x2bc   : > { %2490 = vmatprep.subr.mxu1 %v1090_v50 }
 0x2bd   : > { %2491 = vmatpush3.msra.mxu1 %v1090_v50 }
 0x2be   : > { %2492 = vmatprep.subr.mxu1 %v2477_v47 }
 0x2bf   : > { %2493 = vmatpush3.msra.mxu1 %v2477_v47 }
 0x2c0   : > { %2494 = vmatprep.subr.mxu1 %v1080_v48 }
 0x2c1   : > { %2495 = vmatpush3.msra.mxu1 %v1080_v48 }
 0x2c2   : > { %2496 = vmatprep.subr.mxu1 %v2474_v45 }
 0x2c3   : > { %2497 = vmatpush3.msra.mxu1 %v2474_v45 }
 0x2c4   : > { %2498 = vmatprep.subr.mxu1 %v1070_v46 }
 0x2c5   : > { %2499 = vmatpush3.msra.mxu1 %v1070_v46 }
 0x2c6   : > { %2501 = vmatmul.mubr.msk.f32.vlgmr.msra.gmra.mxu1 %vm644_vm8, %v3060_v27 }
 0x2c7   : > { %2503 = vmatprep.mubr.msk.f32.mxu1 %vm644_vm8, %v3064_v30 }
 0x2ca   : > { %2504 = vmatmul.mubr.msk.f32.gmra.mxu1 %vm644_vm8, %v3076_v56 }
 0x2cb   : > { %2506 = vmatprep.mubr.msk.f32.mxu1 %vm644_vm8, %v3082_v34 }
 0x2ce   : > { %2507 = vmatmul.mubr.msk.f32.gmra.mxu1 %vm644_vm8, %v3094_v39 }
 0x2cf   : > { %2509 = vmatprep.mubr.msk.f32.mxu1 %vm644_vm8, %v3100_v8 }
 0x2d2   : > { %2510 = vmatmul.mubr.msk.f32.gmra.mxu1 %vm644_vm8, %v3111_v13 }
 0x2d3   : > { %2572 = vmatprep.mubr.msk.f32.mxu1 %vm644_vm8, %v3053_v0 }
 0x386   : > { %v2502_v58 = vpop.f32.mrf.mxu1 }
 0x387   : > { %v1188_v59 = vadd.f32 %v2502_v58, %v2157_v57  ;;  %v1518_v58 = vld [vmem:[%s3648_s10 + $0x40] sm:$0xff] }
 0x388   : > { %v1182_v60 = vpop.f32.mrf.mxu1 }
 0x389   : > { %v1183_v61 = vadd.f32 %v2157_v57, %v1182_v60  ;;  %v1230_v23 = vmul.f32 0.01, %v1188_v59  ;;  %vm1222_vm14 = vcmp.ge.f32.partialorder %v1188_v59, 0.0  ;;  %v1516_v60 = vld [vmem:[%s3648_s10 + $0x30] sm:$0xff] }
 0x38a   : > { %v2505_v24 = vpop.f32.mrf.mxu1 }
 0x38b   : > { %v1229_v1 = vmul.f32 0.01, %v1183_v61  ;;  %v1198_v4 = vadd.f32 %v2505_v24, %v2157_v57  ;;  %vm1221_vm15 = vcmp.ge.f32.partialorder %v1183_v61, 0.0  ;;  %v3245_v11 = vsel %vm1222_vm14, %v1188_v59, %v1230_v23  ;;  %v1517_v59 = vld [vmem:[%s3648_s10 + $0x38] sm:$0xff]  ;;  %v1514_v23 = vld [vmem:[%s3648_s10 + $0x20] sm:$0xff] }
 0x38c   : > { %v1192_v6 = vpop.f32.mrf.mxu1  ;;  %v1513_v24 = vld [vmem:[%s3648_s10 + $0x18] sm:$0xff] }
 0x38d   : > { %v1193_v7 = vadd.f32 %v2157_v57, %v1192_v6  ;;  %v3243_v9 = vsel %vm1221_vm15, %v1183_v61, %v1229_v1  ;;  %v1232_v12 = vmul.f32 0.01, %v1198_v4  ;;  %vm1224_vm1 = vcmp.ge.f32.partialorder %v1198_v4, 0.0  ;;  %v1515_v61 = vld [vmem:[%s3648_s10 + $0x28] sm:$0xff]  ;;  %v1512_v1 = vld [vmem:[%s3648_s10 + $0x10] sm:$0xff]  ;;  %v1510_v6 = vld [vmem:[%s3648_s10] sm:$0xff] }
 0x38e   : > { %v2508_v14 = vpop.f32.mrf.mxu1  ;;  %2544 = vmatprep.mubr.f32.mxu0 %v3243_v9 }
 0x38f   : > { %v1231_v15 = vmul.f32 0.01, %v1193_v7  ;;  %v1208_v17 = vadd.f32 %v2508_v14, %v2157_v57  ;;  %2545 = vmatmul.mubr.f32.vlgmr.msra.gmra.mxu0 %v3245_v11  ;;  %vm1223_vm0 = vcmp.ge.f32.partialorder %v1193_v7, 0.0  ;;  %v3252_v37 = vsel %vm1224_vm1, %v1198_v4, %v1232_v12  ;;  %v1511_v4 = vld [vmem:[%s3648_s10 + $0x8] sm:$0xff] }
 0x390   : > { %v1202_v18 = vpop.f32.mrf.mxu1 }
 0x391   : > { %v1203_v19 = vadd.f32 %v2157_v57, %v1202_v18  ;;  %v3249_v21 = vsel %vm1223_vm0, %v1193_v7, %v1231_v15  ;;  %v1234_v25 = vmul.f32 0.01, %v1208_v17  ;;  %vm1226_vm5 = vcmp.ge.f32.partialorder %v1208_v17, 0.0  ;;  %v2166_v7 = vld [vmem:[%s3662_s20] ss:$0 sm:$0xff] }
 0x392   : > { %v2511_v28 = vpop.f32.mrf.mxu1  ;;  %2547 = vmatprep.mubr.f32.mxu0 %v3249_v21  ;;  %s1905_s20 = scalar_select %p1904_p2, 1, 0 }
 0x393   : > { %v1233_v31 = vmul.f32 0.01, %v1203_v19  ;;  %v1218_v32 = vadd.f32 %v2511_v28, %v2157_v57  ;;  %2548 = vmatmul.mubr.f32.gmra.mxu0 %v3252_v37  ;;  %vm1225_vm2 = vcmp.ge.f32.partialorder %v1203_v19, 0.0  ;;  %v3258_v63 = vsel %vm1226_vm5, %v1208_v17, %v1234_v25 }
 0x394   : > { %v1212_v33 = vpop.f32.mrf.mxu1 }
 0x395   : > { %v1213_v62 = vadd.f32 %v2157_v57, %v1212_v33  ;;  %v3255_v35 = vsel %vm1225_vm2, %v1203_v19, %v1233_v31  ;;  %v1236_v38 = vmul.f32 0.01, %v1218_v32  ;;  %vm1228_vm3 = vcmp.ge.f32.partialorder %v1218_v32, 0.0  ;;  %v1519_v57 = vld [vmem:[%s3648_s10 + $0x48] sm:$0xff] }
 0x396   : > { %2550 = vmatprep.mubr.f32.mxu0 %v3255_v35 }
 0x397   : > { %v1235_v40 = vmul.f32 0.01, %v1213_v62  ;;  %2551 = vmatmul.mubr.f32.gmra.mxu0 %v3258_v63  ;;  %vm1227_vm6 = vcmp.ge.f32.partialorder %v1213_v62, 0.0  ;;  %v3264_v43 = vsel %vm1228_vm3, %v1218_v32, %v1236_v38 }
 0x399   : > { %v3261_v41 = vsel %vm1227_vm6, %v1213_v62, %v1235_v40 }
 0x39a   : > { %2553 = vmatprep.mubr.f32.mxu0 %v3261_v41 }
 0x39b   : > { %2554 = vmatmul.mubr.f32.gmra.mxu0 %v3264_v43 }
 0x39c   : > { %2644 = vmatprep.mubr.msk.f32.mxu0 %vm644_vm8, %v3053_v0  ;;  %v1525_v0 = vld [vmem:[%s3648_s10 + $0x78] sm:$0xff] }
 0x44f   : > { %v2546_v44 = vpop.f32.mrf.mxu0 }
 0x451   : > { %v1327_v45 = vpop.f32.mrf.mxu0 }
 0x453   : > { %v2549_v46 = vpop.f32.mrf.mxu0 }
 0x455   : > { %v1337_v47 = vpop.f32.mrf.mxu0 }
 0x457   : > { %v2552_v48 = vpop.f32.mrf.mxu0 }
 0x459   : > { %v1347_v49 = vpop.f32.mrf.mxu0 }
 0x45b   : > { %v2555_v50 = vpop.f32.mrf.mxu0 }
 0x45c   : > { %2556 = vmatprep.subr.mxu1 %v2555_v50 }
 0x45d   : > { %v1357_v51 = vpop.f32.mrf.mxu0  ;;  %2557 = vmatpush3.msra.mxu1 %v2555_v50 }
 0x45e   : > { %2558 = vmatprep.subr.mxu1 %v1357_v51 }
 0x45f   : > { %2559 = vmatpush3.msra.mxu1 %v1357_v51 }
 0x460   : > { %2560 = vmatprep.subr.mxu1 %v2552_v48 }
 0x461   : > { %2561 = vmatpush3.msra.mxu1 %v2552_v48 }
 0x462   : > { %2562 = vmatprep.subr.mxu1 %v1347_v49 }
 0x463   : > { %2563 = vmatpush3.msra.mxu1 %v1347_v49 }
 0x464   : > { %2564 = vmatprep.subr.mxu1 %v2549_v46 }
 0x465   : > { %2565 = vmatpush3.msra.mxu1 %v2549_v46 }
 0x466   : > { %2566 = vmatprep.subr.mxu1 %v1337_v47 }
 0x467   : > { %2567 = vmatpush3.msra.mxu1 %v1337_v47 }
 0x468   : > { %2568 = vmatprep.subr.mxu1 %v2546_v44 }
 0x469   : > { %2569 = vmatpush3.msra.mxu1 %v2546_v44 }
 0x46a   : > { %2570 = vmatprep.subr.mxu1 %v1327_v45 }
 0x46b   : > { %2571 = vmatpush3.msra.mxu1 %v1327_v45 }
 0x46c   : > { %2573 = vmatmul.mubr.msk.f32.vlgmr.msra.gmra.mxu1 %vm644_vm8, %v3060_v27  ;;  %2584 = vmatprep.subr.mxu1 %v1525_v0 }
 0x46d   : > { %2575 = vmatprep.mubr.msk.f32.mxu1 %vm644_vm8, %v3064_v30  ;;  %2585 = vmatpush3.msra.mxu1 %v1525_v0 }
 0x46e   : > { %2586 = vmatprep.subr.mxu1 %v1524_v52 }
 0x46f   : > { %2587 = vmatpush3.msra.mxu1 %v1524_v52 }
 0x470   : > { %2576 = vmatmul.mubr.msk.f32.gmra.mxu1 %vm644_vm8, %v3076_v56  ;;  %2588 = vmatprep.subr.mxu1 %v1523_v10 }
 0x471   : > { %2578 = vmatprep.mubr.msk.f32.mxu1 %vm644_vm8, %v3082_v34  ;;  %2589 = vmatpush3.msra.mxu1 %v1523_v10 }
 0x472   : > { %2590 = vmatprep.subr.mxu1 %v1522_v53 }
 0x473   : > { %2591 = vmatpush3.msra.mxu1 %v1522_v53 }
 0x474   : > { %2579 = vmatmul.mubr.msk.f32.gmra.mxu1 %vm644_vm8, %v3094_v39  ;;  %2592 = vmatprep.subr.mxu1 %v1521_v54 }
 0x475   : > { %2581 = vmatprep.mubr.msk.f32.mxu1 %vm644_vm8, %v3100_v8  ;;  %2593 = vmatpush3.msra.mxu1 %v1521_v54 }
 0x476   : > { %2594 = vmatprep.subr.mxu1 %v1520_v55 }
 0x477   : > { %2595 = vmatpush3.msra.mxu1 %v1520_v55 }
 0x478   : > { %2582 = vmatmul.mubr.msk.f32.gmra.mxu1 %vm644_vm8, %v3111_v13  ;;  %2596 = vmatprep.subr.mxu1 %v1519_v57 }
 0x479   : > { %2597 = vmatpush3.msra.mxu1 %v1519_v57 }
 0x47a   : > { %2598 = vmatprep.subr.mxu1 %v1518_v58 }
 0x47b   : > { %2599 = vmatpush3.msra.mxu1 %v1518_v58 }
 0x47c   : > { %2600 = vmatprep.subr.mxu1 %v1517_v59 }
 0x47d   : > { %2601 = vmatpush3.msra.mxu1 %v1517_v59 }
 0x47e   : > { %2602 = vmatprep.subr.mxu1 %v1516_v60 }
 0x47f   : > { %2603 = vmatpush3.msra.mxu1 %v1516_v60 }
 0x480   : > { %2604 = vmatprep.subr.mxu1 %v1515_v61 }
 0x481   : > { %2605 = vmatpush3.msra.mxu1 %v1515_v61 }
 0x482   : > { %2606 = vmatprep.subr.mxu1 %v1514_v23 }
 0x483   : > { %2607 = vmatpush3.msra.mxu1 %v1514_v23 }
 0x484   : > { %2608 = vmatprep.subr.mxu1 %v1513_v24 }
 0x485   : > { %2609 = vmatpush3.msra.mxu1 %v1513_v24 }
 0x486   : > { %2610 = vmatprep.subr.mxu1 %v1512_v1 }
 0x487   : > { %2611 = vmatpush3.msra.mxu1 %v1512_v1 }
 0x488   : > { %2612 = vmatprep.subr.mxu1 %v1511_v4 }
 0x489   : > { %2613 = vmatpush3.msra.mxu1 %v1511_v4 }
 0x48a   : > { %2614 = vmatprep.subr.mxu1 %v1510_v6 }
 0x48b   : > { %2615 = vmatpush3.msra.mxu1 %v1510_v6 }
 0x52c   : > { %v2574_v12 = vpop.f32.mrf.mxu1 }
 0x52d   : > { %v1445_v14 = vadd.f32 %v2574_v12, %v2166_v7 }
 0x52e   : > { %v1439_v15 = vpop.f32.mrf.mxu1 }
 0x52f   : > { %vm1479_vm4 = vcmp.ge.f32.partialorder %v1445_v14, 0.0  ;;  %v1487_v17 = vmul.f32 0.01, %v1445_v14  ;;  %v1440_v18 = vadd.f32 %v2166_v7, %v1439_v15 }
 0x530   : > { %v2577_v19 = vpop.f32.mrf.mxu1 }
 0x531   : > { %vm1478_vm7 = vcmp.ge.f32.partialorder %v1440_v18, 0.0  ;;  %v1486_v25 = vmul.f32 0.01, %v1440_v18  ;;  %v1455_v28 = vadd.f32 %v2577_v19, %v2166_v7  ;;  %v1495_v31 = vsel %vm1479_vm4, %v1445_v14, %v1487_v17  ;;  %v1947_v17 = vld [vmem:[%s3650_s12 + $0x30] sm:$0xff]  ;;  %v1945_v19 = vld [vmem:[%s3650_s12 + $0x20] sm:$0xff] }
 0x532   : > { %v1449_v32 = vpop.f32.mrf.mxu1  ;;  %v3338_v45 = vadd.f32 %v1495_v31, %v3152_v3  ;;  %v1942_v31 = vld [vmem:[%s3650_s12 + $0x8] sm:$0xff] }
 0x533   : > { %vm1481_vm9 = vcmp.ge.f32.partialorder %v1455_v28, 0.0  ;;  %v1489_v33 = vmul.f32 0.01, %v1455_v28  ;;  %v1450_v62 = vadd.f32 %v2166_v7, %v1449_v32  ;;  %v1494_v38 = vsel %vm1478_vm7, %v1440_v18, %v1486_v25  ;;  %v1946_v18 = vld [vmem:[%s3650_s12 + $0x28] sm:$0xff]  ;;  %v1944_v25 = vld [vmem:[%s3650_s12 + $0x18] sm:$0xff]  ;;  %v1941_v32 = vld [vmem:[%s3650_s12] sm:$0xff] }
 0x534   : > { %v2580_v40 = vpop.f32.mrf.mxu1  ;;  %v3335_v44 = vadd.f32 %v1494_v38, %v3150_v2  ;;  %v1803_v38 = vstv %s3447_s27  ;;  %s3575_s27 = scalar_select %p1850_p13, 1, 0 }
 0x535   : > { %vm1480_vm10 = vcmp.ge.f32.partialorder %v1450_v62, 0.0  ;;  %v1488_v46 = vmul.f32 0.01, %v1450_v62  ;;  %v1465_v47 = vadd.f32 %v2580_v40, %v2166_v7  ;;  %v1497_v49 = vsel %vm1481_vm9, %v1455_v28, %v1489_v33  ;;  %v1943_v28 = vld [vmem:[%s3650_s12 + $0x10] sm:$0xff] }
 0x536   : > { %v1459_v48 = vpop.f32.mrf.mxu1  ;;  %2616 = vmatprep.mubr.f32.mxu1 %v3335_v44  ;;  %v3346_v53 = vadd.f32 %v1497_v49, %v3159_v16  ;;  %v1839_v49 = vstv %s3454_s0  ;;  %vm3479_vm1 = vcmp.lt.s32.totalorder %v2858_v5, %v1803_v38  ;;  %s1887_s0 = scalar_select %p1886_p1, 1, 0 }
 0x537   : > { %vm1483_vm11 = vcmp.ge.f32.partialorder %v1465_v47, 0.0  ;;  %v1491_v50 = vmul.f32 0.01, %v1465_v47  ;;  %v1460_v51 = vadd.f32 %v2166_v7, %v1459_v48  ;;  %2617 = vmatmul.mubr.f32.vlgmr.msra.gmra.mxu1 %v3338_v45  ;;  %v1496_v0 = vsel %vm1480_vm10, %v1450_v62, %v1488_v46 }
 0x538   : > { %v2583_v52 = vpop.f32.mrf.mxu1  ;;  %v3343_v2 = vadd.f32 %v1496_v0, %v3156_v36  ;;  %v1785_v46 = vstv %s3451_s9  ;;  %v1875_v0 = vstv %s3458_s19  ;;  %vm3489_vm5 = vcmp.lt.s32.totalorder %v2858_v5, %v1839_v49  ;;  %s3559_s9 = scalar_select %p1832_p12, 1, 0 }
 0x539   : > { %vm1482_vm12 = vcmp.ge.f32.partialorder %v1460_v51, 0.0  ;;  %v1490_v3 = vmul.f32 0.01, %v1460_v51  ;;  %v1475_v10 = vadd.f32 %v2583_v52, %v2166_v7  ;;  %v1499_v55 = vsel %vm1483_vm11, %v1465_v47, %v1491_v50  ;;  %s1923_s19 = scalar_select %p1922_p3, 1, 0 }
 0x53a   : > { %v1469_v54 = vpop.f32.mrf.mxu1  ;;  %2619 = vmatprep.mubr.f32.mxu1 %v3343_v2  ;;  %v3354_v61 = vadd.f32 %v1499_v55, %v3165_v26  ;;  %vm3484_vm2 = vcmp.lt.s32.totalorder %v2858_v5, %v1785_v46  ;;  %vm3504_vm4 = vcmp.lt.s32.totalorder %v2858_v5, %v1875_v0 }
 0x53b   : > { %vm1485_vm13 = vcmp.ge.f32.partialorder %v1475_v10, 0.0  ;;  %v1493_v57 = vmul.f32 0.01, %v1475_v10  ;;  %v1470_v58 = vadd.f32 %v2166_v7, %v1469_v54  ;;  %2620 = vmatmul.mubr.f32.gmra.mxu1 %v3346_v53  ;;  %v1498_v59 = vsel %vm1482_vm12, %v1460_v51, %v1490_v3 }
 0x53c   : > { %v3351_v60 = vadd.f32 %v1498_v59, %v3162_v22  ;;  %v1821_v51 = vstv %s3456_s18  ;;  %s3581_s18 = scalar_select %p1868_p0, 1, 0 }
 0x53d   : > { %vm1484_vm14 = vcmp.ge.f32.partialorder %v1470_v58, 0.0  ;;  %v1492_v36 = vmul.f32 0.01, %v1470_v58  ;;  %v1501_v16 = vsel %vm1485_vm13, %v1475_v10, %v1493_v57  ;;  %vm3499_vm3 = vcmp.lt.s32.totalorder %v2858_v5, %v1821_v51 }
 0x53e   : > { %2622 = vmatprep.mubr.f32.mxu1 %v3351_v60  ;;  %v3362_v1 = vadd.f32 %v1501_v16, %v3171_v42  ;;  %v1948_v42 = vld [vmem:[%s3650_s12 + $0x38] sm:$0xff] }
 0x53f   : > { %2623 = vmatmul.mubr.f32.gmra.mxu1 %v3354_v61  ;;  %v1500_v23 = vsel %vm1484_vm14, %v1470_v58, %v1492_v36 }
 0x540   : > { %v3359_v24 = vadd.f32 %v1500_v23, %v3168_v29  ;;  %v1949_v29 = vld [vmem:[%s3650_s12 + $0x40] sm:$0xff] }
 0x542   : > { %2625 = vmatprep.mubr.f32.mxu1 %v3359_v24 }
 0x543   : > { %2626 = vmatmul.mubr.f32.gmra.mxu1 %v3362_v1 }
 0x5f7   : > { %v2618_v22 = vpop.f32.mrf.mxu1 }
 0x5f9   : > { %v1592_v4 = vpop.f32.mrf.mxu1 }
 0x5fb   : > { %v2621_v26 = vpop.f32.mrf.mxu1 }
 0x5fd   : > { %v1602_v6 = vpop.f32.mrf.mxu1 }
 0x5ff   : > { %v2624_v7 = vpop.f32.mrf.mxu1 }
 0x601   : > { %v1612_v12 = vpop.f32.mrf.mxu1 }
 0x603   : > { %v2627_v14 = vpop.f32.mrf.mxu1 }
 0x604   : > { %2628 = vmatprep.subr.mxu0 %v2627_v14 }
 0x605   : > { %v1622_v15 = vpop.f32.mrf.mxu1  ;;  %2629 = vmatpush3.msra.mxu0 %v2627_v14 }
 0x606   : > { %2630 = vmatprep.subr.mxu0 %v1622_v15 }
 0x607   : > { %2631 = vmatpush3.msra.mxu0 %v1622_v15 }
 0x608   : > { %2632 = vmatprep.subr.mxu0 %v2624_v7 }
 0x609   : > { %2633 = vmatpush3.msra.mxu0 %v2624_v7 }
 0x60a   : > { %2634 = vmatprep.subr.mxu0 %v1612_v12 }
 0x60b   : > { %2635 = vmatpush3.msra.mxu0 %v1612_v12 }
 0x60c   : > { %2636 = vmatprep.subr.mxu0 %v2621_v26 }
 0x60d   : > { %2637 = vmatpush3.msra.mxu0 %v2621_v26 }
 0x60e   : > { %2638 = vmatprep.subr.mxu0 %v1602_v6 }
 0x60f   : > { %2639 = vmatpush3.msra.mxu0 %v1602_v6 }
 0x610   : > { %2640 = vmatprep.subr.mxu0 %v2618_v22 }
 0x611   : > { %2641 = vmatpush3.msra.mxu0 %v2618_v22 }
 0x612   : > { %2642 = vmatprep.subr.mxu0 %v1592_v4 }
 0x613   : > { %2643 = vmatpush3.msra.mxu0 %v1592_v4 }
 0x614   : > { %2645 = vmatmul.mubr.msk.f32.vlgmr.msra.gmra.mxu0 %vm644_vm8, %v3060_v27  ;;  %2656 = vmatprep.subr.mxu0 %v2745_v20  ;;  %v1956_v27 = vld [vmem:[%s3650_s12 + $0x78] sm:$0xff] }
 0x615   : > { %2647 = vmatprep.mubr.msk.f32.mxu0 %vm644_vm8, %v3064_v30  ;;  %2657 = vmatpush3.msra.mxu0 %v1956_v27  ;;  %v1955_v30 = vld [vmem:[%s3650_s12 + $0x70] sm:$0xff] }
 0x616   : > { %2658 = vmatprep.subr.mxu0 %v2745_v20 }
 0x617   : > { %2659 = vmatpush3.msra.mxu0 %v1955_v30  ;;  %v1857_v30 = vstv %s3469_s23 }
 0x618   : > { %2648 = vmatmul.mubr.msk.f32.gmra.mxu0 %vm644_vm8, %v3076_v56  ;;  %2660 = vmatprep.subr.mxu0 %v2745_v20  ;;  %v1954_v56 = vld [vmem:[%s3650_s12 + $0x68] sm:$0xff]  ;;  %vm3542_vm12 = vcmp.lt.s32.totalorder %v2858_v5, %v1857_v30  ;;  %v1816_v30 = vstv %s3553_s30 }
 0x619   : > { %2650 = vmatprep.mubr.msk.f32.mxu0 %vm644_vm8, %v3082_v34  ;;  %2661 = vmatpush3.msra.mxu0 %v1954_v56  ;;  %v1953_v34 = vld [vmem:[%s3650_s12 + $0x60] sm:$0xff] }
 0x61a   : > { %2662 = vmatprep.subr.mxu0 %v2745_v20 }
 0x61b   : > { %2663 = vmatpush3.msra.mxu0 %v1953_v34 }
 0x61c   : > { %2651 = vmatmul.mubr.msk.f32.gmra.mxu0 %vm644_vm8, %v3094_v39  ;;  %2664 = vmatprep.subr.mxu0 %v2745_v20  ;;  %v1952_v39 = vld [vmem:[%s3650_s12 + $0x58] sm:$0xff] }
 0x61d   : > { %2653 = vmatprep.mubr.msk.f32.mxu0 %vm644_vm8, %v3100_v8  ;;  %2665 = vmatpush3.msra.mxu0 %v1952_v39  ;;  %v1951_v8 = vld [vmem:[%s3650_s12 + $0x50] sm:$0xff] }
 0x61e   : > { %2666 = vmatprep.subr.mxu0 %v2745_v20 }
 0x61f   : > { %2667 = vmatpush3.msra.mxu0 %v1951_v8 }
 0x620   : > { %2654 = vmatmul.mubr.msk.f32.gmra.mxu0 %vm644_vm8, %v3111_v13  ;;  %2668 = vmatprep.subr.mxu0 %v2745_v20  ;;  %v1950_v13 = vld [vmem:[%s3650_s12 + $0x48] sm:$0xff]  ;;  %vm2746_vm8 = vmmov 0  }
 0x621   : > { %2669 = vmatpush3.msra.mxu0 %v1950_v13  ;;  %2688 = vmatprep.mubr.msk.f32.mxu0 %vm2746_vm8, %v2745_v20 }
 0x622   : > { %2670 = vmatprep.subr.mxu0 %v2745_v20 }
 0x623   : > { %2671 = vmatpush3.msra.mxu0 %v1949_v29 }
 0x624   : > { %2672 = vmatprep.subr.mxu0 %v2745_v20 }
 0x625   : > { %2673 = vmatpush3.msra.mxu0 %v1948_v42 }
 0x626   : > { %2674 = vmatprep.subr.mxu0 %v2745_v20 }
 0x627   : > { %2675 = vmatpush3.msra.mxu0 %v1947_v17 }
 0x628   : > { %2676 = vmatprep.subr.mxu0 %v2745_v20 }
 0x629   : > { %2677 = vmatpush3.msra.mxu0 %v1946_v18 }
 0x62a   : > { %2678 = vmatprep.subr.mxu0 %v2745_v20 }
 0x62b   : > { %2679 = vmatpush3.msra.mxu0 %v1945_v19 }
 0x62c   : > { %2680 = vmatprep.subr.mxu0 %v2745_v20 }
 0x62d   : > { %2681 = vmatpush3.msra.mxu0 %v1944_v25 }
 0x62e   : > { %2682 = vmatprep.subr.mxu0 %v2745_v20 }
 0x62f   : > { %2683 = vmatpush3.msra.mxu0 %v1943_v28 }
 0x630   : > { %2684 = vmatprep.subr.mxu0 %v2745_v20 }
 0x631   : > { %2685 = vmatpush3.msra.mxu0 %v1942_v31 }
 0x632   : > { %2686 = vmatprep.subr.mxu0 %v2745_v20  ;;  %v3463_v20 = vld [vmem:[%s3649_s11] ss:$0 sm:$0xff] }
 0x633   : > { %2687 = vmatpush3.msra.mxu0 %v1941_v32 }
 0x6d4   : > { %v2646_v33 = vpop.f32.mrf.mxu0 }
 0x6d5   : > { %v1710_v62 = vadd.f32 %v2646_v33, %v3463_v20 }
 0x6d6   : > { %v1704_v40 = vpop.f32.mrf.mxu0 }
 0x6d7   : > { %vm1744_vm15 = vcmp.ge.f32.partialorder %v1710_v62, 0.0  ;;  %v1752_v47 = vmul.f32 0.01, %v1710_v62  ;;  %v1705_v48 = vadd.f32 %v3463_v20, %v1704_v40 }
 0x6d8   : > { %v2649_v50 = vpop.f32.mrf.mxu0 }
 0x6d9   : > { %v1760_v52 = vsel %vm1744_vm15, %v1710_v62, %v1752_v47  ;;  %vm1743_vm0 = vcmp.ge.f32.partialorder %v1705_v48, 0.0  ;;  %v1751_v3 = vmul.f32 0.01, %v1705_v48  ;;  %v1720_v10 = vadd.f32 %v2649_v50, %v3463_v20 }
 0x6da   : > { %v1768_v54 = vadd.f32 %v1760_v52, %v3245_v11  ;;  %v1714_v59 = vpop.f32.mrf.mxu0 }
 0x6db   : > { %v1759_v36 = vsel %vm1743_vm0, %v1705_v48, %v1751_v3  ;;  %vm1746_vm6 = vcmp.ge.f32.partialorder %v1720_v10, 0.0  ;;  %v1754_v11 = vmul.f32 0.01, %v1720_v10  ;;  %v1715_v16 = vadd.f32 %v3463_v20, %v1714_v59 }
 0x6dc   : > { %v1776_v23 = vadd.f32 %v1768_v54, %v3338_v45  ;;  %v1767_v22 = vadd.f32 %v1759_v36, %v3243_v9  ;;  %v2652_v26 = vpop.f32.mrf.mxu0  ;;  %v1906_v3 = vstv %s1905_s20 }
 0x6dd   : > { %v1762_v7 = vsel %vm1746_vm6, %v1720_v10, %v1754_v11  ;;  %vm1745_vm7 = vcmp.ge.f32.partialorder %v1715_v16, 0.0  ;;  %v1753_v12 = vmul.f32 0.01, %v1715_v16  ;;  %v1730_v14 = vadd.f32 %v2652_v26, %v3463_v20 }
 0x6de   : > { %v1807_v9 = vsel %vm3479_vm1, %v1776_v23, -3.4028235e+38  ;;  %v1775_v45 = vadd.f32 %v1767_v22, %v3335_v44  ;;  %v1770_v15 = vadd.f32 %v1762_v7, %v3252_v37  ;;  %v1724_v27 = vpop.f32.mrf.mxu0  ;;  %v1798_v22 = vstv %s3539_s29 }
 0x6df   : > { %v1808_v56 = vrot.slane %v1807_v9, 4  ;;  %v1761_v34 = vsel %vm1745_vm7, %v1715_v16, %v1753_v12  ;;  %vm1748_vm9 = vcmp.ge.f32.partialorder %v1730_v14, 0.0  ;;  %v1756_v39 = vmul.f32 0.01, %v1730_v14 }
 0x6e0   : > { %v1789_v8 = vsel %vm3484_vm2, %v1775_v45, -3.4028235e+38  ;;  %v1778_v13 = vadd.f32 %v1770_v15, %v3346_v53  ;;  %v1769_v29 = vadd.f32 %v1761_v34, %v3249_v21  ;;  %v1725_v42 = vadd.f32 %v3463_v20, %v1724_v27  ;;  %v2655_v44 = vpop.f32.mrf.mxu0 }
 0x6e1   : > { %v1809_v37 = vmax.f32 %v1807_v9, %v1808_v56  ;;  %v1790_v17 = vrot.slane %v1789_v8, 4  ;;  %v1764_v18 = vsel %vm1748_vm9, %v1730_v14, %v1756_v39  ;;  %v1740_v19 = vadd.f32 %v2655_v44, %v3463_v20 }
 0x6e2   : > { %v1843_v25 = vsel %vm3489_vm5, %v1778_v13, -3.4028235e+38  ;;  %v1777_v28 = vadd.f32 %v1769_v29, %v3343_v2  ;;  %v1772_v31 = vadd.f32 %v1764_v18, %v3258_v63  ;;  %v1911_v53 = vstv %s3493_s26  ;;  %v1734_v62 = vpop.f32.mrf.mxu0  ;;  %s2131_s26 = sshll.u32 %s3688_s15, 3 }
 0x6e3   : > { %v1791_v32 = vmax.f32 %v1789_v8, %v1790_v17  ;;  %v1844_v21 = vrot.slane %v1843_v25, 4  ;;  %vm1747_vm10 = vcmp.ge.f32.partialorder %v1725_v42, 0.0  ;;  %v1755_v33 = vmul.f32 0.01, %v1725_v42  ;;  %s523_s29 = scalar_lea.vmem %s3653_s16, %s2131_s26 }
 0x6e4   : > { %v1825_v38 = vsel %vm3499_vm3, %v1777_v28, -3.4028235e+38  ;;  %v1780_v40 = vadd.f32 %v1772_v31, %v3354_v61  ;;  %vm1750_vm11 = vcmp.ge.f32.partialorder %v1740_v19, 0.0  ;;  %v1758_v63 = vmul.f32 0.01, %v1740_v19 }
 0x6e5   : > { %v1810_v2 = vrot.slane %v1809_v37, 2  ;;  %v1792_v46 = vrot.slane %v1791_v32, 2  ;;  %v1845_v47 = vmax.f32 %v1843_v25, %v1844_v21  ;;  %v1826_v48 = vrot.slane %v1825_v38, 4 }
 0x6e6   : > { %v1879_v49 = vsel %vm3504_vm4, %v1780_v40, -3.4028235e+38  ;;  %v1763_v50 = vsel %vm1747_vm10, %v1725_v42, %v1755_v33  ;;  %v1766_v51 = vsel %vm1750_vm11, %v1740_v19, %v1758_v63  ;;  %v1735_v0 = vadd.f32 %v3463_v20, %v1734_v62 }
 0x6e7   : > { %v1827_v61 = vmax.f32 %v1825_v38, %v1826_v48  ;;  %vm3547_vm13 = vcmp.lt.s32.totalorder %v2858_v5, %v1911_v53  ;;  %v1793_v20 = vmax.f32 %v1791_v32, %v1792_v46  ;;  %v1880_v10 = vrot.slane %v1879_v49, 4 }
 0x6e8   : > { %v1771_v54 = vadd.f32 %v1763_v50, %v3255_v35  ;;  %v1774_v55 = vadd.f32 %v1766_v51, %v3264_v43  ;;  %v1811_v57 = vmax.f32 %v1809_v37, %v1810_v2  ;;  %v1846_v58 = vrot.slane %v1845_v47, 2 }
 0x6e9   : > { %v1828_v59 = vrot.slane %v1827_v61, 2  ;;  %vm1749_vm14 = vcmp.ge.f32.partialorder %v1735_v0, 0.0  ;;  %v1881_v36 = vmax.f32 %v1879_v49, %v1880_v10  ;;  %v1757_v23 = vmul.f32 0.01, %v1735_v0 }
 0x6ea   : > { %v1779_v11 = vadd.f32 %v1771_v54, %v3351_v60  ;;  %v1782_v16 = vadd.f32 %v1774_v55, %v3362_v1  ;;  %v1893_v43 = vstv %s3527_s17  ;;  %v1794_v4 = vrot.slane %v1793_v20, 1 }
 0x6eb   : > { %v1829_v35 = vmax.f32 %v1827_v61, %v1828_v59  ;;  %v1765_v7 = vsel %vm1749_vm14, %v1735_v0, %v1757_v23  ;;  %v1812_v60 = vrot.slane %v1811_v57, 1  ;;  %v1834_v1 = vstv %s3559_s9 }
 0x6ec   : > { %v1861_v26 = vsel %vm3542_vm12, %v1779_v11, -3.4028235e+38  ;;  %v1915_v6 = vsel %vm3547_vm13, %v1782_v16, -3.4028235e+38  ;;  %v1847_v9 = vmax.f32 %v1845_v47, %v1846_v58  ;;  %v1882_v45 = vrot.slane %v1881_v36, 2 }
 0x6ed   : > { %v1830_v12 = vrot.slane %v1829_v35, 1  ;;  %v1862_v14 = vrot.slane %v1861_v26, 4  ;;  %v1916_v15 = vrot.slane %v1915_v6, 4  ;;  %v1773_v27 = vadd.f32 %v1765_v7, %v3261_v41 }
 0x6ee   : > { %vm1894_vm8 = vcmp.lt.s32.totalorder %v2858_v5, %v1893_v43  ;;  %v1795_v34 = vmax.f32 %v1793_v20, %v1794_v4  ;;  %vm3583_vm15 = vcmp.eq.s32.totalorder %v1798_v22, 1  ;;  %v1813_v13 = vmax.f32 %v1811_v57, %v1812_v60  ;;  %v2185_v4 = vld [vmem:[%s3651_s13] ss:$0 sm:$0xff] }
 0x6ef   : > { %v1863_v56 = vmax.f32 %v1861_v26, %v1862_v14  ;;  %v1917_v8 = vmax.f32 %v1915_v6, %v1916_v15  ;;  %v1781_v41 = vadd.f32 %v1773_v27, %v3359_v24  ;;  %v1831_v29 = vmax.f32 %v1829_v35, %v1830_v12  ;;  %v2186_v60 = vld [vmem:[%s3652_s14] ss:$0 sm:$0xff] }
 0x6f0   : > { %vm3589_vm0 = vcmp.eq.s32.totalorder %v1834_v1, 1  ;;  %v1848_v44 = vrot.slane %v1847_v9, 1  ;;  %v1883_v37 = vmax.f32 %v1881_v36, %v1882_v45  ;;  %vm3595_vm1 = vcmp.eq.s32.totalorder %v1816_v30, 1 }
 0x6f1   : > { %v1864_v42 = vrot.slane %v1863_v56, 2  ;;  %v1918_v17 = vrot.slane %v1917_v8, 2  ;;  %v1897_v18 = vsel %vm1894_vm8, %v1781_v41, -3.4028235e+38  ;;  %v1870_v28 = vstv %s3581_s18 }
 0x6f2   : > { %v1898_v25 = vrot.slane %v1897_v18, 4  ;;  %v1800_v31 = vsel %vm3583_vm15, %v1795_v34, 0.0  ;;  %v1852_v53 = vstv %s3575_s27  ;;  %vm1927_vm2 = vcmask 1040384  }
 0x6f3   : > { %v1865_v24 = vmax.f32 %v1863_v56, %v1864_v42  ;;  %v1919_v32 = vmax.f32 %v1917_v8, %v1918_v17  ;;  %v1836_v21 = vsel %vm3589_vm0, %v1831_v29, 0.0  ;;  %vm1929_vm5 = vcmask 1041408  }
 0x6f4   : > { %v1899_v62 = vmax.f32 %v1897_v18, %v1898_v25  ;;  %v1818_v38 = vsel %vm3595_vm1, %v1813_v13, 0.0  ;;  %v1849_v40 = vmax.f32 %v1847_v9, %v1848_v44  ;;  %v1884_v63 = vrot.slane %v1883_v37, 1  ;;  %v2187_v9 = vld [vmem:[#allocation4] ss:$0 sm:$0xff] }
 0x6f5   : > { %v1866_v33 = vrot.slane %v1865_v24, 1  ;;  %vm3611_vm6 = vcmp.eq.s32.totalorder %v1870_v28, 1  ;;  %vm3617_vm3 = vcmp.eq.s32.totalorder %v1852_v53, 1  ;;  %v1928_v49 = vsel %vm1927_vm2, %v1800_v31, %v1818_v38 }
 0x6f6   : > { %v1900_v47 = vrot.slane %v1899_v62, 2  ;;  %v1888_v50 = vstv %s1887_s0  ;;  %v1920_v51 = vrot.slane %v1919_v32, 1  ;;  %v1930_v0 = vsel %vm1929_vm5, %v1928_v49, %v1836_v21 }
 0x6f7   : > { %v1867_v46 = vmax.f32 %v1865_v24, %v1866_v33  ;;  %vm1931_vm4 = vcmask 1042432   ;;  %vm1933_vm7 = vcmask 1043456   ;;  %v1854_v20 = vsel %vm3617_vm3, %v1849_v40, 0.0 }
 0x6f8   : > { %v1901_v61 = vmax.f32 %v1899_v62, %v1900_v47  ;;  %v1885_v10 = vmax.f32 %v1883_v37, %v1884_v63  ;;  %v1924_v54 = vstv %s1923_s19  ;;  %vm1889_vm9 = vcmp.eq.s32.totalorder %v1888_v50, 1 }
 0x6f9   : > { %v1872_v52 = vsel %vm3611_vm6, %v1867_v46, 0.0  ;;  %v1932_v57 = vsel %vm1931_vm4, %v1930_v0, %v1854_v20  ;;  %vm1907_vm10 = vcmp.eq.s32.totalorder %v1906_v3, 1  ;;  %v1921_v58 = vmax.f32 %v1919_v32, %v1920_v51 }
 0x6fa   : > { %v1902_v55 = vrot.slane %v1901_v61, 1  ;;  %v1934_v59 = vsel %vm1933_vm7, %v1932_v57, %v1872_v52  ;;  %vm1935_vm11 = vcmask 1044480   ;;  %vm1925_vm12 = vcmp.eq.s32.totalorder %v1924_v54, 1 }
 0x6fb   : > { %vm1937_vm13 = vcmask 1045504   ;;  %v1890_v11 = vsel %vm1889_vm9, %v1885_v10, 0.0  ;;  %vm1939_vm14 = vcmask 1046528   ;;  %v1926_v22 = vsel %vm1925_vm12, %v1921_v58, 0.0 }
 0x6fc   : > { %v1903_v36 = vmax.f32 %v1901_v61, %v1902_v55  ;;  %v1936_v23 = vsel %vm1935_vm11, %v1934_v59, %v1890_v11  ;;  %vm2043_vm8 = vcmask 261120   ;;  %vm2055_vm15 = vcmask 7168  }
 0x6fe   : > { %v1908_v16 = vsel %vm1907_vm10, %v1903_v36, 0.0 }
 0x6ff   : > { %v1938_v35 = vsel %vm1937_vm13, %v1936_v23, %v1908_v16 }
 0x700   : > { %v1940_v43 = vsel %vm1939_vm14, %v1938_v35, %v1926_v22 }
 0x701   : > { %2689 = vmatmul.mubr.f32.vlgmr.msra.gmra.mxu0 %v1940_v43 }
 0x7c1   : > { %v2030_v26 = vpop.f32.mrf.mxu0 }
 0x7c2   : > { %v2031_v6 = vadd.f32 %v2185_v4, %v2030_v26 }
 0x7c3   : > { %v2690_v7 = vpop.f32.mrf.mxu0 }
 0x7c4   : > { %v2034_v12 = vmax.f32 %v2031_v6, 0.0 }
 0x7c6   : > { %v2042_v1 = vmul.f32 %v2186_v60, %v2034_v12 }
 0x7c8   : > { %v2044_v14 = vsel %vm2043_vm8, %v2042_v1, 0.0 }
 0x7c9   : > { %2045 = vadd.xlane.f32.xlu0 %v2044_v14 }
 0x852   : > { %v2046_v45 = vpop.xlane.xlu0 %2045 }
 0x853   : > { %v2054_v15 = vadd.f32 %v2187_v9, %v2046_v45 }
 0x855   : > { %2056 = vst.msk [vmem:[%s523_s29] sm:$0xff] %vm2055_vm15, %v2054_v15 }
 0x856 PF: > { %s34_s28 = sadd.s32 1, %s2741_s28  }
 0x857   : > { %p31_p4 = scmp.ge.s32.totalorder %s34_s28, 4  }
 0x859   :  { %33 = sbr.rel (!%p31_p4) target bundleno = 24 (0x18), region = 113 }

</bundles_post_ra>
